<compile_context>
chip_gen: v5e
topology: v5e:2x2
jax: 0.10.0
libtpu: 0.0.40
codegen_flags: <defaults>
</compile_context>

<pallas_src>
import functools
import math

import jax
import jax.numpy as jnp
from jax import lax
from jax.experimental import pallas as pl
from jax.experimental.pallas import tpu as pltpu

_EPS = 1e-5  # nn.LayerNorm default eps


def _layernorm(x, g, b):
    mu = jnp.mean(x, axis=-1, keepdims=True)
    xc = x - mu
    var = jnp.mean(xc * xc, axis=-1, keepdims=True)  # biased variance (PyTorch LayerNorm)
    return xc * lax.rsqrt(var + _EPS) * g + b


# ---------------- fused encoder kernel ----------------

def encoder_stack_kernel(
    x_ref, bias_ref,
    g1_ref, bln1_ref, wqkv_ref, bqkv_ref, wo_ref, bo_ref,
    g2_ref, bln2_ref, w1_ref, b1_ref, w2_ref, b2_ref,
    fg_ref, fb_ref,
    o_ref, attn_scratch,
    *, heads):
    """grid = (batch_tile, layer). o_ref carries the residual stream across layers."""
    l = pl.program_id(1)
    n_layers = pl.num_programs(1)

    # First layer for this batch tile: load the residual stream.
    @pl.when(l == 0)
    def _():
        o_ref[...] = x_ref[...]

    TB, S, D = o_ref.shape
    M = TB * S
    dk = D // heads

    x = o_ref[...].reshape(M, D)                     # (TB*S, D) f32 residual stream

    # ---- pre-norm self-attention block ----
    z = _layernorm(x, g1_ref[0], bln1_ref[0])
    # Fused QKV matmul; 1/sqrt(dk) is already folded into the Q columns.
    qkv = (jnp.dot(z.astype(jnp.bfloat16), wqkv_ref[0],
                   preferred_element_type=jnp.float32) + bqkv_ref[0])   # (M, 3D)
    qkv = qkv.reshape(TB, S, 3 * D)

    bias = bias_ref[...].astype(jnp.float32)         # (TB, S_q, S_k) additive mask

    for h in range(heads):                           # heads are contiguous dk-wide column blocks
        lo = h * dk
        qh = qkv[:, :, lo:lo + dk].astype(jnp.bfloat16)
        kh = qkv[:, :, D + lo:D + lo + dk].astype(jnp.bfloat16)
        vh = qkv[:, :, 2 * D + lo:2 * D + lo + dk].astype(jnp.bfloat16)

        # scores (scale pre-folded) + mask bias, f32
        s = jnp.einsum('bqd,bkd->bqk', qh, kh,
                       preferred_element_type=jnp.float32) + bias
        m = jnp.max(s, axis=-1, keepdims=True)
        e = jnp.exp(s - m)
        # Deferred normalization: scale the (S, dk) result, not the (S, S) probs.
        acc = jnp.einsum('bqk,bkd->bqd', e.astype(jnp.bfloat16), vh,
                         preferred_element_type=jnp.float32)
        inv = pl.reciprocal(jnp.sum(e, axis=-1, keepdims=True), approx=True)
        # TODO(synk): attention dropout is identity at inference.
        attn_scratch[:, :, lo:lo + dk] = (acc * inv).astype(jnp.bfloat16)

    attn_out = (jnp.dot(attn_scratch[...].reshape(M, D), wo_ref[0],
                        preferred_element_type=jnp.float32) + bo_ref[0])
    x = x + attn_out

    # ---- pre-norm feed-forward block ----
    z2 = _layernorm(x, g2_ref[0], bln2_ref[0])
    hid = jnp.maximum(jnp.dot(z2.astype(jnp.bfloat16), w1_ref[0],
                              preferred_element_type=jnp.float32) + b1_ref[0], 0.0)
    x = x + (jnp.dot(hid.astype(jnp.bfloat16), w2_ref[0],
                     preferred_element_type=jnp.float32) + b2_ref[0])

    @pl.when(l < n_layers - 1)
    def _():
        o_ref[...] = x.reshape(TB, S, D)

    # Final encoder LayerNorm fused into the last layer step.
    @pl.when(l == n_layers - 1)
    def _():
        o_ref[...] = _layernorm(x, fg_ref[...], fb_ref[...]).reshape(TB, S, D)


# ---------------- wrapper ----------------

def encoder_forward(x, mask, params, *, batch_tile=None):
    """x: (seq, batch, d_model); mask: (seq_q or 1, seq_k, batch or 1)."""
    S, B, D = x.shape
    H = params['heads']
    L = params['n_layers']
    F = params['d_ff']

    # Fold as much batch as possible into the block while keeping >= 2 programs
    # on the parallel axis (v7x has 2 TensorCores).
    if batch_tile is None:
        batch_tile = B // 2 if (B % 2 == 0 and B >= 2) else B
    assert B % batch_tile == 0, "batch must be divisible by batch_tile"
    TB = batch_tile

    # Mask glue (once per forward, shared across heads & layers):
    # (S_q|1, S_k, B|1) -> additive bias (B, S_q, S_k) of 0 / -1e9, stored bf16.
    mask_b = jnp.broadcast_to(mask, (S, S, B))
    bias = jnp.transpose(
        jnp.where(mask_b == 0, jnp.float32(-1e9), jnp.float32(0.0)),
        (2, 0, 1)).astype(jnp.bfloat16)

    # Boundary layout glue: (S, B, D) -> (B, S, D) so batch is a blockable axis.
    xb = jnp.transpose(x.astype(jnp.float32), (1, 0, 2))

    kernel = functools.partial(encoder_stack_kernel, heads=H)

    def batch_spec(shape):
        return pl.BlockSpec((TB,) + shape, lambda b, l: (b, 0, 0))

    def layer_spec(shape):
        return pl.BlockSpec((1,) + shape, lambda b, l: (l, 0, 0))

    def fixed_spec(shape):
        return pl.BlockSpec(shape, lambda b, l: (0, 0))

    grid_spec = pltpu.PrefetchScalarGridSpec(
        num_scalar_prefetch=0,
        grid=(B // TB, L),
        in_specs=[
            batch_spec((S, D)),        # x (residual stream seed)
            batch_spec((S, S)),        # additive mask bias (bf16)
            layer_spec((1, D)),        # ln1 gamma
            layer_spec((1, D)),        # ln1 beta
            layer_spec((D, 3 * D)),    # fused W_qkv (bf16, Q pre-scaled)
            layer_spec((1, 3 * D)),    # fused b_qkv (Q pre-scaled)
            layer_spec((D, D)),        # W_o (bf16)
            layer_spec((1, D)),        # b_o
            layer_spec((1, D)),        # ln2 gamma
            layer_spec((1, D)),        # ln2 beta
            layer_spec((D, F)),        # W1 (bf16)
            layer_spec((1, F)),        # b1
            layer_spec((F, D)),        # W2 (bf16)
            layer_spec((1, D)),        # b2
            fixed_spec((1, D)),        # final LN gamma
            fixed_spec((1, D)),        # final LN beta
        ],
        out_specs=pl.BlockSpec((TB, S, D), lambda b, l: (b, 0, 0)),
        scratch_shapes=[pltpu.VMEM((TB, S, D), jnp.bfloat16)],  # concat-heads buffer
    )

    out = pl.pallas_call(
        kernel,
        out_shape=jax.ShapeDtypeStruct((B, S, D), jnp.float32),
        grid_spec=grid_spec,
        input_output_aliases={0: 0},   # residual stream updated in place
        compiler_params=pltpu.CompilerParams(
            dimension_semantics=("parallel", "arbitrary"),
            vmem_limit_bytes=64 * 1024 * 1024),
    )(xb, bias,
      params['ln1_g'], params['ln1_b'], params['wqkv'], params['bqkv'],
      params['wo'], params['bo'], params['ln2_g'], params['ln2_b'],
      params['w1'], params['b1'], params['w2'], params['b2'],
      params['final_ln_g'], params['final_ln_b'])

    return jnp.transpose(out, (1, 0, 2))   # back to (S, B, D)


# ---------------- deterministic parameter init ----------------

def _linear_params(key, d_in, d_out):
    kw, kb = jax.random.split(key)
    w = jax.random.normal(kw, (d_in, d_out), jnp.float32) * 0.02
    b = jax.random.normal(kb, (1, d_out), jnp.float32) * 0.02
    return w, b


def init_params(key, d_model, d_ff, heads, n_layers):
    dk = d_model // heads
    scale = 1.0 / math.sqrt(dk)

    wqkv, bqkv, wo, bo, w1, b1, w2, b2 = ([] for _ in range(8))
    keys = jax.random.split(key, n_layers)
    for i in range(n_layers):
        ks = jax.random.split(keys[i], 6)
        wq, bq_ = _linear_params(ks[0], d_model, d_model)
        wk, bk_ = _linear_params(ks[1], d_model, d_model)
        wv, bv_ = _linear_params(ks[2], d_model, d_model)
        wo_i, bo_i = _linear_params(ks[3], d_model, d_model)
        w1_i, b1_i = _linear_params(ks[4], d_model, d_ff)
        w2_i, b2_i = _linear_params(ks[5], d_ff, d_model)
        # Fold the 1/sqrt(d_k) attention scale into the Q projection (zero runtime cost).
        wq = wq * scale
        bq_ = bq_ * scale
        wqkv.append(jnp.concatenate([wq, wk, wv], axis=1))
        bqkv.append(jnp.concatenate([bq_, bk_, bv_], axis=1))
        wo.append(wo_i); bo.append(bo_i)
        w1.append(w1_i); b1.append(b1_i)
        w2.append(w2_i); b2.append(b2_i)

    return dict(
        heads=heads, n_layers=n_layers, d_ff=d_ff,
        ln1_g=jnp.ones((n_layers, 1, d_model), jnp.float32),
        ln1_b=jnp.zeros((n_layers, 1, d_model), jnp.float32),
        wqkv=jnp.stack(wqkv).astype(jnp.bfloat16),
        bqkv=jnp.stack(bqkv),
        wo=jnp.stack(wo).astype(jnp.bfloat16),
        bo=jnp.stack(bo),
        ln2_g=jnp.ones((n_layers, 1, d_model), jnp.float32),
        ln2_b=jnp.zeros((n_layers, 1, d_model), jnp.float32),
        w1=jnp.stack(w1).astype(jnp.bfloat16),
        b1=jnp.stack(b1),
        w2=jnp.stack(w2).astype(jnp.bfloat16),
        b2=jnp.stack(b2),
        final_ln_g=jnp.ones((1, d_model), jnp.float32),
        final_ln_b=jnp.zeros((1, d_model), jnp.float32),
    )


if __name__ == "__main__":
    SEQ, BATCH, D_MODEL, HEADS, D_FF, N_LAYERS = 8, 2, 32, 4, 64, 2

    key = jax.random.PRNGKey(0)
    kx, kp = jax.random.split(key)
    x = jax.random.normal(kx, (SEQ, BATCH, D_MODEL), jnp.float32)
    mask = jnp.ones((SEQ, SEQ, BATCH), jnp.float32)  # full (unmasked) attention

    params = init_params(kp, D_MODEL, D_FF, HEADS, N_LAYERS)

    out = encoder_forward(x, mask, params)
    out = jax.block_until_ready(out)

    assert out.shape == (SEQ, BATCH, D_MODEL)
    assert bool(jnp.all(jnp.isfinite(out)))
    print("KERNEL_OK")
</pallas_src>

<mosaic_0001>
module attributes {stable_mosaic.version = 11 : i64} {
  func.func @encoder_stack_kernel(%arg0: i32, %arg1: i32, %arg2: memref<1x8x32xf32, #tpu.memory_space<vmem>>, %arg3: memref<1x8x8xbf16, #tpu.memory_space<vmem>>, %arg4: memref<1x1x32xf32, #tpu.memory_space<vmem>>, %arg5: memref<1x1x32xf32, #tpu.memory_space<vmem>>, %arg6: memref<1x32x96xbf16, #tpu.memory_space<vmem>>, %arg7: memref<1x1x96xf32, #tpu.memory_space<vmem>>, %arg8: memref<1x32x32xbf16, #tpu.memory_space<vmem>>, %arg9: memref<1x1x32xf32, #tpu.memory_space<vmem>>, %arg10: memref<1x1x32xf32, #tpu.memory_space<vmem>>, %arg11: memref<1x1x32xf32, #tpu.memory_space<vmem>>, %arg12: memref<1x32x64xbf16, #tpu.memory_space<vmem>>, %arg13: memref<1x1x64xf32, #tpu.memory_space<vmem>>, %arg14: memref<1x64x32xbf16, #tpu.memory_space<vmem>>, %arg15: memref<1x1x32xf32, #tpu.memory_space<vmem>>, %arg16: memref<1x32xf32, #tpu.memory_space<vmem>>, %arg17: memref<1x32xf32, #tpu.memory_space<vmem>>, %arg18: memref<1x8x32xf32, #tpu.memory_space<vmem>>, %arg19: memref<1x8x32xbf16, #tpu.memory_space<vmem>>) attributes {dimension_semantics = [#tpu.dimension_semantics<parallel>, #tpu.dimension_semantics<arbitrary>], iteration_bounds = array<i64: 2, 2>, scalar_prefetch = 0 : i64, scratch_operands = 1 : i64, tpu.core_type = #tpu.core_type<tc>, window_params = [{transform_indices = @transform_0, window_bounds = array<i64: 1, 8, 32>}, {transform_indices = @transform_1, window_bounds = array<i64: 1, 8, 8>}, {transform_indices = @transform_2, window_bounds = array<i64: 1, 1, 32>}, {transform_indices = @transform_3, window_bounds = array<i64: 1, 1, 32>}, {transform_indices = @transform_4, window_bounds = array<i64: 1, 32, 96>}, {transform_indices = @transform_5, window_bounds = array<i64: 1, 1, 96>}, {transform_indices = @transform_6, window_bounds = array<i64: 1, 32, 32>}, {transform_indices = @transform_7, window_bounds = array<i64: 1, 1, 32>}, {transform_indices = @transform_8, window_bounds = array<i64: 1, 1, 32>}, {transform_indices = @transform_9, window_bounds = array<i64: 1, 1, 32>}, {transform_indices = @transform_10, window_bounds = array<i64: 1, 32, 64>}, {transform_indices = @transform_11, window_bounds = array<i64: 1, 1, 64>}, {transform_indices = @transform_12, window_bounds = array<i64: 1, 64, 32>}, {transform_indices = @transform_13, window_bounds = array<i64: 1, 1, 32>}, {pipeline_mode = #tpu.pipeline_mode<synchronous>, transform_indices = @transform_14, window_bounds = array<i64: 1, 32>}, {pipeline_mode = #tpu.pipeline_mode<synchronous>, transform_indices = @transform_15, window_bounds = array<i64: 1, 32>}, {transform_indices = @transform_16, window_bounds = array<i64: 1, 8, 32>}]} {
    %c0_i32 = arith.constant 0 : i32
    %0 = arith.cmpi eq, %arg1, %c0_i32 : i32
    %1 = arith.extui %0 : i1 to i32
    %c0_i32_0 = arith.constant 0 : i32
    %2 = arith.cmpi ne, %1, %c0_i32_0 : i32
    scf.if %2 {
      %c0_87 = arith.constant 0 : index
      %c0_88 = arith.constant 0 : index
      %c0_89 = arith.constant 0 : index
      %187 = vector.load %arg2[%c0_87, %c0_88, %c0_89] : memref<1x8x32xf32, #tpu.memory_space<vmem>>, vector<1x8x32xf32>
      %c0_90 = arith.constant 0 : index
      %c0_91 = arith.constant 0 : index
      %c0_92 = arith.constant 0 : index
      %188 = vector.load %arg18[%c0_90, %c0_91, %c0_92] : memref<1x8x32xf32, #tpu.memory_space<vmem>>, vector<1x8x32xf32>
      tpu.vector_store %arg18[%c0_90, %c0_91, %c0_92], %187 {strides = array<i32>} : memref<1x8x32xf32, #tpu.memory_space<vmem>>, vector<1x8x32xf32>,
    } else {
    }
    %c0 = arith.constant 0 : index
    %c0_1 = arith.constant 0 : index
    %c0_2 = arith.constant 0 : index
    %3 = vector.load %arg18[%c0, %c0_1, %c0_2] : memref<1x8x32xf32, #tpu.memory_space<vmem>>, vector<1x8x32xf32>
    %4 = vector.shape_cast %3 : vector<1x8x32xf32> to vector<8x32xf32>
    %c0_3 = arith.constant 0 : index
    %c0_4 = arith.constant 0 : index
    %c0_5 = arith.constant 0 : index
    %5 = vector.load %arg4[%c0_3, %c0_4, %c0_5] : memref<1x1x32xf32, #tpu.memory_space<vmem>>, vector<1x1x32xf32>
    %6 = vector.shape_cast %5 : vector<1x1x32xf32> to vector<1x32xf32>
    %c0_6 = arith.constant 0 : index
    %c0_7 = arith.constant 0 : index
    %c0_8 = arith.constant 0 : index
    %7 = vector.load %arg5[%c0_6, %c0_7, %c0_8] : memref<1x1x32xf32, #tpu.memory_space<vmem>>, vector<1x1x32xf32>
    %8 = vector.shape_cast %7 : vector<1x1x32xf32> to vector<1x32xf32>
    %cst = arith.constant dense<0.000000e+00> : vector<8xf32>
    %9 = vector.multi_reduction <add>, %4, %cst [1] : vector<8x32xf32> to vector<8xf32>
    %10 = vector.shape_cast %9 : vector<8xf32> to vector<8x1xf32>
    %cst_9 = arith.constant 3.200000e+01 : f32
    %11 = vector.broadcast %cst_9 : f32 to vector<8x1xf32>
    %12 = arith.divf %10, %11 : vector<8x1xf32>
    %13 = vector.broadcast %12 : vector<8x1xf32> to vector<8x32xf32>
    %14 = arith.subf %4, %13 : vector<8x32xf32>
    %15 = arith.mulf %14, %14 : vector<8x32xf32>
    %cst_10 = arith.constant dense<0.000000e+00> : vector<8xf32>
    %16 = vector.multi_reduction <add>, %15, %cst_10 [1] : vector<8x32xf32> to vector<8xf32>
    %17 = vector.shape_cast %16 : vector<8xf32> to vector<8x1xf32>
    %cst_11 = arith.constant 3.200000e+01 : f32
    %18 = vector.broadcast %cst_11 : f32 to vector<8x1xf32>
    %19 = arith.divf %17, %18 : vector<8x1xf32>
    %cst_12 = arith.constant 9.99999974E-6 : f32
    %20 = vector.broadcast %cst_12 : f32 to vector<8x1xf32>
    %21 = arith.addf %19, %20 : vector<8x1xf32>
    %22 = math.rsqrt %21 : vector<8x1xf32>
    %23 = vector.broadcast %22 : vector<8x1xf32> to vector<8x32xf32>
    %24 = arith.mulf %14, %23 : vector<8x32xf32>
    %25 = vector.broadcast %6 : vector<1x32xf32> to vector<8x32xf32>
    %26 = arith.mulf %24, %25 : vector<8x32xf32>
    %27 = vector.broadcast %8 : vector<1x32xf32> to vector<8x32xf32>
    %28 = arith.addf %26, %27 : vector<8x32xf32>
    %29 = arith.truncf %28 : vector<8x32xf32> to vector<8x32xbf16>
    %c0_13 = arith.constant 0 : index
    %c0_14 = arith.constant 0 : index
    %c0_15 = arith.constant 0 : index
    %30 = vector.load %arg6[%c0_13, %c0_14, %c0_15] : memref<1x32x96xbf16, #tpu.memory_space<vmem>>, vector<1x32x96xbf16>
    %31 = vector.shape_cast %30 : vector<1x32x96xbf16> to vector<32x96xbf16>
    %cst_16 = arith.constant dense<0.000000e+00> : vector<8x96xf32>
    %32 = tpu.matmul %29, %31, %cst_16 {dimension_numbers = #tpu.dot_dimension_numbers<[1], [0], [0], [1], [0, 0, 1, 1], [], []>} : vector<8x32xbf16>, vector<32x96xbf16>, vector<8x96xf32> -> vector<8x96xf32>
    %c0_17 = arith.constant 0 : index
    %c0_18 = arith.constant 0 : index
    %c0_19 = arith.constant 0 : index
    %33 = vector.load %arg7[%c0_17, %c0_18, %c0_19] : memref<1x1x96xf32, #tpu.memory_space<vmem>>, vector<1x1x96xf32>
    %34 = vector.shape_cast %33 : vector<1x1x96xf32> to vector<1x96xf32>
    %35 = vector.broadcast %34 : vector<1x96xf32> to vector<8x96xf32>
    %36 = arith.addf %32, %35 : vector<8x96xf32>
    %37 = vector.shape_cast %36 : vector<8x96xf32> to vector<1x8x96xf32>
    %c0_20 = arith.constant 0 : index
    %c0_21 = arith.constant 0 : index
    %c0_22 = arith.constant 0 : index
    %38 = vector.load %arg3[%c0_20, %c0_21, %c0_22] : memref<1x8x8xbf16, #tpu.memory_space<vmem>>, vector<1x8x8xbf16>
    %39 = arith.extf %38 : vector<1x8x8xbf16> to vector<1x8x8xf32>
    %40 = vector.extract_strided_slice %37 {offsets = [0, 0, 0], sizes = [1, 8, 8], strides = [1, 1, 1]} : vector<1x8x96xf32> to vector<1x8x8xf32>
    %41 = arith.truncf %40 : vector<1x8x8xf32> to vector<1x8x8xbf16>
    %42 = vector.extract_strided_slice %37 {offsets = [0, 0, 32], sizes = [1, 8, 8], strides = [1, 1, 1]} : vector<1x8x96xf32> to vector<1x8x8xf32>
    %43 = arith.truncf %42 : vector<1x8x8xf32> to vector<1x8x8xbf16>
    %44 = vector.extract_strided_slice %37 {offsets = [0, 0, 64], sizes = [1, 8, 8], strides = [1, 1, 1]} : vector<1x8x96xf32> to vector<1x8x8xf32>
    %45 = arith.truncf %44 : vector<1x8x8xf32> to vector<1x8x8xbf16>
    "tpu.trace_start"() <{level = 10 : i32, message = "bqd,bkd->bqk"}> : () -> ()
    %cst_23 = arith.constant dense<0.000000e+00> : vector<1x8x8xf32>
    %46 = tpu.matmul %41, %43, %cst_23 {dimension_numbers = #tpu.dot_dimension_numbers<[2], [2], [1], [1], [0, 0, 0, 1, 1, 1], [0], [0]>} : vector<1x8x8xbf16>, vector<1x8x8xbf16>, vector<1x8x8xf32> -> vector<1x8x8xf32>
    "tpu.trace_stop"() : () -> ()
    %47 = arith.addf %46, %39 : vector<1x8x8xf32>
    %cst_24 = arith.constant dense<0xFF800000> : vector<1x8xf32>
    %48 = vector.multi_reduction <maximumf>, %47, %cst_24 [2] : vector<1x8x8xf32> to vector<1x8xf32>
    %49 = vector.shape_cast %48 : vector<1x8xf32> to vector<1x8x1xf32>
    %50 = vector.broadcast %49 : vector<1x8x1xf32> to vector<1x8x8xf32>
    %51 = arith.subf %47, %50 : vector<1x8x8xf32>
    %52 = math.exp %51 : vector<1x8x8xf32>
    %53 = arith.truncf %52 : vector<1x8x8xf32> to vector<1x8x8xbf16>
    "tpu.trace_start"() <{level = 10 : i32, message = "bqk,bkd->bqd"}> : () -> ()
    %cst_25 = arith.constant dense<0.000000e+00> : vector<1x8x8xf32>
    %54 = tpu.matmul %53, %45, %cst_25 {dimension_numbers = #tpu.dot_dimension_numbers<[2], [1], [1], [2], [0, 0, 0, 1, 1, 2], [0], [0]>} : vector<1x8x8xbf16>, vector<1x8x8xbf16>, vector<1x8x8xf32> -> vector<1x8x8xf32>
    "tpu.trace_stop"() : () -> ()
    %cst_26 = arith.constant dense<0.000000e+00> : vector<1x8xf32>
    %55 = vector.multi_reduction <add>, %52, %cst_26 [2] : vector<1x8x8xf32> to vector<1x8xf32>
    %56 = vector.shape_cast %55 : vector<1x8xf32> to vector<1x8x1xf32>
    %57 = tpu.reciprocal %56 {approx = true} : vector<1x8x1xf32> -> vector<1x8x1xf32>
    %58 = vector.broadcast %57 : vector<1x8x1xf32> to vector<1x8x8xf32>
    %59 = arith.mulf %54, %58 : vector<1x8x8xf32>
    %60 = arith.truncf %59 : vector<1x8x8xf32> to vector<1x8x8xbf16>
    %c0_27 = arith.constant 0 : index
    %c0_28 = arith.constant 0 : index
    %c0_29 = arith.constant 0 : index
    %61 = vector.load %arg19[%c0_27, %c0_28, %c0_29] : memref<1x8x32xbf16, #tpu.memory_space<vmem>>, vector<1x8x8xbf16>
    tpu.vector_store %arg19[%c0_27, %c0_28, %c0_29], %60 {strides = array<i32>} : memref<1x8x32xbf16, #tpu.memory_space<vmem>>, vector<1x8x8xbf16>,
    %62 = vector.extract_strided_slice %37 {offsets = [0, 0, 8], sizes = [1, 8, 8], strides = [1, 1, 1]} : vector<1x8x96xf32> to vector<1x8x8xf32>
    %63 = arith.truncf %62 : vector<1x8x8xf32> to vector<1x8x8xbf16>
    %64 = vector.extract_strided_slice %37 {offsets = [0, 0, 40], sizes = [1, 8, 8], strides = [1, 1, 1]} : vector<1x8x96xf32> to vector<1x8x8xf32>
    %65 = arith.truncf %64 : vector<1x8x8xf32> to vector<1x8x8xbf16>
    %66 = vector.extract_strided_slice %37 {offsets = [0, 0, 72], sizes = [1, 8, 8], strides = [1, 1, 1]} : vector<1x8x96xf32> to vector<1x8x8xf32>
    %67 = arith.truncf %66 : vector<1x8x8xf32> to vector<1x8x8xbf16>
    "tpu.trace_start"() <{level = 10 : i32, message = "bqd,bkd->bqk"}> : () -> ()
    %cst_30 = arith.constant dense<0.000000e+00> : vector<1x8x8xf32>
    %68 = tpu.matmul %63, %65, %cst_30 {dimension_numbers = #tpu.dot_dimension_numbers<[2], [2], [1], [1], [0, 0, 0, 1, 1, 1], [0], [0]>} : vector<1x8x8xbf16>, vector<1x8x8xbf16>, vector<1x8x8xf32> -> vector<1x8x8xf32>
    "tpu.trace_stop"() : () -> ()
    %69 = arith.addf %68, %39 : vector<1x8x8xf32>
    %cst_31 = arith.constant dense<0xFF800000> : vector<1x8xf32>
    %70 = vector.multi_reduction <maximumf>, %69, %cst_31 [2] : vector<1x8x8xf32> to vector<1x8xf32>
    %71 = vector.shape_cast %70 : vector<1x8xf32> to vector<1x8x1xf32>
    %72 = vector.broadcast %71 : vector<1x8x1xf32> to vector<1x8x8xf32>
    %73 = arith.subf %69, %72 : vector<1x8x8xf32>
    %74 = math.exp %73 : vector<1x8x8xf32>
    %75 = arith.truncf %74 : vector<1x8x8xf32> to vector<1x8x8xbf16>
    "tpu.trace_start"() <{level = 10 : i32, message = "bqk,bkd->bqd"}> : () -> ()
    %cst_32 = arith.constant dense<0.000000e+00> : vector<1x8x8xf32>
    %76 = tpu.matmul %75, %67, %cst_32 {dimension_numbers = #tpu.dot_dimension_numbers<[2], [1], [1], [2], [0, 0, 0, 1, 1, 2], [0], [0]>} : vector<1x8x8xbf16>, vector<1x8x8xbf16>, vector<1x8x8xf32> -> vector<1x8x8xf32>
    "tpu.trace_stop"() : () -> ()
    %cst_33 = arith.constant dense<0.000000e+00> : vector<1x8xf32>
    %77 = vector.multi_reduction <add>, %74, %cst_33 [2] : vector<1x8x8xf32> to vector<1x8xf32>
    %78 = vector.shape_cast %77 : vector<1x8xf32> to vector<1x8x1xf32>
    %79 = tpu.reciprocal %78 {approx = true} : vector<1x8x1xf32> -> vector<1x8x1xf32>
    %80 = vector.broadcast %79 : vector<1x8x1xf32> to vector<1x8x8xf32>
    %81 = arith.mulf %76, %80 : vector<1x8x8xf32>
    %82 = arith.truncf %81 : vector<1x8x8xf32> to vector<1x8x8xbf16>
    %c0_34 = arith.constant 0 : index
    %c0_35 = arith.constant 0 : index
    %c8 = arith.constant 8 : index
    %83 = vector.load %arg19[%c0_34, %c0_35, %c8] : memref<1x8x32xbf16, #tpu.memory_space<vmem>>, vector<1x8x8xbf16>
    tpu.vector_store %arg19[%c0_34, %c0_35, %c8], %82 {strides = array<i32>} : memref<1x8x32xbf16, #tpu.memory_space<vmem>>, vector<1x8x8xbf16>,
    %84 = vector.extract_strided_slice %37 {offsets = [0, 0, 16], sizes = [1, 8, 8], strides = [1, 1, 1]} : vector<1x8x96xf32> to vector<1x8x8xf32>
    %85 = arith.truncf %84 : vector<1x8x8xf32> to vector<1x8x8xbf16>
    %86 = vector.extract_strided_slice %37 {offsets = [0, 0, 48], sizes = [1, 8, 8], strides = [1, 1, 1]} : vector<1x8x96xf32> to vector<1x8x8xf32>
    %87 = arith.truncf %86 : vector<1x8x8xf32> to vector<1x8x8xbf16>
    %88 = vector.extract_strided_slice %37 {offsets = [0, 0, 80], sizes = [1, 8, 8], strides = [1, 1, 1]} : vector<1x8x96xf32> to vector<1x8x8xf32>
    %89 = arith.truncf %88 : vector<1x8x8xf32> to vector<1x8x8xbf16>
    "tpu.trace_start"() <{level = 10 : i32, message = "bqd,bkd->bqk"}> : () -> ()
    %cst_36 = arith.constant dense<0.000000e+00> : vector<1x8x8xf32>
    %90 = tpu.matmul %85, %87, %cst_36 {dimension_numbers = #tpu.dot_dimension_numbers<[2], [2], [1], [1], [0, 0, 0, 1, 1, 1], [0], [0]>} : vector<1x8x8xbf16>, vector<1x8x8xbf16>, vector<1x8x8xf32> -> vector<1x8x8xf32>
    "tpu.trace_stop"() : () -> ()
    %91 = arith.addf %90, %39 : vector<1x8x8xf32>
    %cst_37 = arith.constant dense<0xFF800000> : vector<1x8xf32>
    %92 = vector.multi_reduction <maximumf>, %91, %cst_37 [2] : vector<1x8x8xf32> to vector<1x8xf32>
    %93 = vector.shape_cast %92 : vector<1x8xf32> to vector<1x8x1xf32>
    %94 = vector.broadcast %93 : vector<1x8x1xf32> to vector<1x8x8xf32>
    %95 = arith.subf %91, %94 : vector<1x8x8xf32>
    %96 = math.exp %95 : vector<1x8x8xf32>
    %97 = arith.truncf %96 : vector<1x8x8xf32> to vector<1x8x8xbf16>
    "tpu.trace_start"() <{level = 10 : i32, message = "bqk,bkd->bqd"}> : () -> ()
    %cst_38 = arith.constant dense<0.000000e+00> : vector<1x8x8xf32>
    %98 = tpu.matmul %97, %89, %cst_38 {dimension_numbers = #tpu.dot_dimension_numbers<[2], [1], [1], [2], [0, 0, 0, 1, 1, 2], [0], [0]>} : vector<1x8x8xbf16>, vector<1x8x8xbf16>, vector<1x8x8xf32> -> vector<1x8x8xf32>
    "tpu.trace_stop"() : () -> ()
    %cst_39 = arith.constant dense<0.000000e+00> : vector<1x8xf32>
    %99 = vector.multi_reduction <add>, %96, %cst_39 [2] : vector<1x8x8xf32> to vector<1x8xf32>
    %100 = vector.shape_cast %99 : vector<1x8xf32> to vector<1x8x1xf32>
    %101 = tpu.reciprocal %100 {approx = true} : vector<1x8x1xf32> -> vector<1x8x1xf32>
    %102 = vector.broadcast %101 : vector<1x8x1xf32> to vector<1x8x8xf32>
    %103 = arith.mulf %98, %102 : vector<1x8x8xf32>
    %104 = arith.truncf %103 : vector<1x8x8xf32> to vector<1x8x8xbf16>
    %c0_40 = arith.constant 0 : index
    %c0_41 = arith.constant 0 : index
    %c16 = arith.constant 16 : index
    %105 = vector.load %arg19[%c0_40, %c0_41, %c16] : memref<1x8x32xbf16, #tpu.memory_space<vmem>>, vector<1x8x8xbf16>
    tpu.vector_store %arg19[%c0_40, %c0_41, %c16], %104 {strides = array<i32>} : memref<1x8x32xbf16, #tpu.memory_space<vmem>>, vector<1x8x8xbf16>,
    %106 = vector.extract_strided_slice %37 {offsets = [0, 0, 24], sizes = [1, 8, 8], strides = [1, 1, 1]} : vector<1x8x96xf32> to vector<1x8x8xf32>
    %107 = arith.truncf %106 : vector<1x8x8xf32> to vector<1x8x8xbf16>
    %108 = vector.extract_strided_slice %37 {offsets = [0, 0, 56], sizes = [1, 8, 8], strides = [1, 1, 1]} : vector<1x8x96xf32> to vector<1x8x8xf32>
    %109 = arith.truncf %108 : vector<1x8x8xf32> to vector<1x8x8xbf16>
    %110 = vector.extract_strided_slice %37 {offsets = [0, 0, 88], sizes = [1, 8, 8], strides = [1, 1, 1]} : vector<1x8x96xf32> to vector<1x8x8xf32>
    %111 = arith.truncf %110 : vector<1x8x8xf32> to vector<1x8x8xbf16>
    "tpu.trace_start"() <{level = 10 : i32, message = "bqd,bkd->bqk"}> : () -> ()
    %cst_42 = arith.constant dense<0.000000e+00> : vector<1x8x8xf32>
    %112 = tpu.matmul %107, %109, %cst_42 {dimension_numbers = #tpu.dot_dimension_numbers<[2], [2], [1], [1], [0, 0, 0, 1, 1, 1], [0], [0]>} : vector<1x8x8xbf16>, vector<1x8x8xbf16>, vector<1x8x8xf32> -> vector<1x8x8xf32>
    "tpu.trace_stop"() : () -> ()
    %113 = arith.addf %112, %39 : vector<1x8x8xf32>
    %cst_43 = arith.constant dense<0xFF800000> : vector<1x8xf32>
    %114 = vector.multi_reduction <maximumf>, %113, %cst_43 [2] : vector<1x8x8xf32> to vector<1x8xf32>
    %115 = vector.shape_cast %114 : vector<1x8xf32> to vector<1x8x1xf32>
    %116 = vector.broadcast %115 : vector<1x8x1xf32> to vector<1x8x8xf32>
    %117 = arith.subf %113, %116 : vector<1x8x8xf32>
    %118 = math.exp %117 : vector<1x8x8xf32>
    %119 = arith.truncf %118 : vector<1x8x8xf32> to vector<1x8x8xbf16>
    "tpu.trace_start"() <{level = 10 : i32, message = "bqk,bkd->bqd"}> : () -> ()
    %cst_44 = arith.constant dense<0.000000e+00> : vector<1x8x8xf32>
    %120 = tpu.matmul %119, %111, %cst_44 {dimension_numbers = #tpu.dot_dimension_numbers<[2], [1], [1], [2], [0, 0, 0, 1, 1, 2], [0], [0]>} : vector<1x8x8xbf16>, vector<1x8x8xbf16>, vector<1x8x8xf32> -> vector<1x8x8xf32>
    "tpu.trace_stop"() : () -> ()
    %cst_45 = arith.constant dense<0.000000e+00> : vector<1x8xf32>
    %121 = vector.multi_reduction <add>, %118, %cst_45 [2] : vector<1x8x8xf32> to vector<1x8xf32>
    %122 = vector.shape_cast %121 : vector<1x8xf32> to vector<1x8x1xf32>
    %123 = tpu.reciprocal %122 {approx = true} : vector<1x8x1xf32> -> vector<1x8x1xf32>
    %124 = vector.broadcast %123 : vector<1x8x1xf32> to vector<1x8x8xf32>
    %125 = arith.mulf %120, %124 : vector<1x8x8xf32>
    %126 = arith.truncf %125 : vector<1x8x8xf32> to vector<1x8x8xbf16>
    %c0_46 = arith.constant 0 : index
    %c0_47 = arith.constant 0 : index
    %c24 = arith.constant 24 : index
    %127 = vector.load %arg19[%c0_46, %c0_47, %c24] : memref<1x8x32xbf16, #tpu.memory_space<vmem>>, vector<1x8x8xbf16>
    tpu.vector_store %arg19[%c0_46, %c0_47, %c24], %126 {strides = array<i32>} : memref<1x8x32xbf16, #tpu.memory_space<vmem>>, vector<1x8x8xbf16>,
    %c0_48 = arith.constant 0 : index
    %c0_49 = arith.constant 0 : index
    %c0_50 = arith.constant 0 : index
    %128 = vector.load %arg19[%c0_48, %c0_49, %c0_50] : memref<1x8x32xbf16, #tpu.memory_space<vmem>>, vector<1x8x32xbf16>
    %129 = vector.shape_cast %128 : vector<1x8x32xbf16> to vector<8x32xbf16>
    %c0_51 = arith.constant 0 : index
    %c0_52 = arith.constant 0 : index
    %c0_53 = arith.constant 0 : index
    %130 = vector.load %arg8[%c0_51, %c0_52, %c0_53] : memref<1x32x32xbf16, #tpu.memory_space<vmem>>, vector<1x32x32xbf16>
    %131 = vector.shape_cast %130 : vector<1x32x32xbf16> to vector<32x32xbf16>
    %cst_54 = arith.constant dense<0.000000e+00> : vector<8x32xf32>
    %132 = tpu.matmul %129, %131, %cst_54 {dimension_numbers = #tpu.dot_dimension_numbers<[1], [0], [0], [1], [0, 0, 1, 1], [], []>} : vector<8x32xbf16>, vector<32x32xbf16>, vector<8x32xf32> -> vector<8x32xf32>
    %c0_55 = arith.constant 0 : index
    %c0_56 = arith.constant 0 : index
    %c0_57 = arith.constant 0 : index
    %133 = vector.load %arg9[%c0_55, %c0_56, %c0_57] : memref<1x1x32xf32, #tpu.memory_space<vmem>>, vector<1x1x32xf32>
    %134 = vector.shape_cast %133 : vector<1x1x32xf32> to vector<1x32xf32>
    %135 = vector.broadcast %134 : vector<1x32xf32> to vector<8x32xf32>
    %136 = arith.addf %132, %135 : vector<8x32xf32>
    %137 = arith.addf %4, %136 : vector<8x32xf32>
    %c0_58 = arith.constant 0 : index
    %c0_59 = arith.constant 0 : index
    %c0_60 = arith.constant 0 : index
    %138 = vector.load %arg10[%c0_58, %c0_59, %c0_60] : memref<1x1x32xf32, #tpu.memory_space<vmem>>, vector<1x1x32xf32>
    %139 = vector.shape_cast %138 : vector<1x1x32xf32> to vector<1x32xf32>
    %c0_61 = arith.constant 0 : index
    %c0_62 = arith.constant 0 : index
    %c0_63 = arith.constant 0 : index
    %140 = vector.load %arg11[%c0_61, %c0_62, %c0_63] : memref<1x1x32xf32, #tpu.memory_space<vmem>>, vector<1x1x32xf32>
    %141 = vector.shape_cast %140 : vector<1x1x32xf32> to vector<1x32xf32>
    %cst_64 = arith.constant dense<0.000000e+00> : vector<8xf32>
    %142 = vector.multi_reduction <add>, %137, %cst_64 [1] : vector<8x32xf32> to vector<8xf32>
    %143 = vector.shape_cast %142 : vector<8xf32> to vector<8x1xf32>
    %cst_65 = arith.constant 3.200000e+01 : f32
    %144 = vector.broadcast %cst_65 : f32 to vector<8x1xf32>
    %145 = arith.divf %143, %144 : vector<8x1xf32>
    %146 = vector.broadcast %145 : vector<8x1xf32> to vector<8x32xf32>
    %147 = arith.subf %137, %146 : vector<8x32xf32>
    %148 = arith.mulf %147, %147 : vector<8x32xf32>
    %cst_66 = arith.constant dense<0.000000e+00> : vector<8xf32>
    %149 = vector.multi_reduction <add>, %148, %cst_66 [1] : vector<8x32xf32> to vector<8xf32>
    %150 = vector.shape_cast %149 : vector<8xf32> to vector<8x1xf32>
    %cst_67 = arith.constant 3.200000e+01 : f32
    %151 = vector.broadcast %cst_67 : f32 to vector<8x1xf32>
    %152 = arith.divf %150, %151 : vector<8x1xf32>
    %cst_68 = arith.constant 9.99999974E-6 : f32
    %153 = vector.broadcast %cst_68 : f32 to vector<8x1xf32>
    %154 = arith.addf %152, %153 : vector<8x1xf32>
    %155 = math.rsqrt %154 : vector<8x1xf32>
    %156 = vector.broadcast %155 : vector<8x1xf32> to vector<8x32xf32>
    %157 = arith.mulf %147, %156 : vector<8x32xf32>
    %158 = vector.broadcast %139 : vector<1x32xf32> to vector<8x32xf32>
    %159 = arith.mulf %157, %158 : vector<8x32xf32>
    %160 = vector.broadcast %141 : vector<1x32xf32> to vector<8x32xf32>
    %161 = arith.addf %159, %160 : vector<8x32xf32>
    %162 = arith.truncf %161 : vector<8x32xf32> to vector<8x32xbf16>
    %c0_69 = arith.constant 0 : index
    %c0_70 = arith.constant 0 : index
    %c0_71 = arith.constant 0 : index
    %163 = vector.load %arg12[%c0_69, %c0_70, %c0_71] : memref<1x32x64xbf16, #tpu.memory_space<vmem>>, vector<1x32x64xbf16>
    %164 = vector.shape_cast %163 : vector<1x32x64xbf16> to vector<32x64xbf16>
    %cst_72 = arith.constant dense<0.000000e+00> : vector<8x64xf32>
    %165 = tpu.matmul %162, %164, %cst_72 {dimension_numbers = #tpu.dot_dimension_numbers<[1], [0], [0], [1], [0, 0, 1, 1], [], []>} : vector<8x32xbf16>, vector<32x64xbf16>, vector<8x64xf32> -> vector<8x64xf32>
    %c0_73 = arith.constant 0 : index
    %c0_74 = arith.constant 0 : index
    %c0_75 = arith.constant 0 : index
    %166 = vector.load %arg13[%c0_73, %c0_74, %c0_75] : memref<1x1x64xf32, #tpu.memory_space<vmem>>, vector<1x1x64xf32>
    %167 = vector.shape_cast %166 : vector<1x1x64xf32> to vector<1x64xf32>
    %168 = vector.broadcast %167 : vector<1x64xf32> to vector<8x64xf32>
    %169 = arith.addf %165, %168 : vector<8x64xf32>
    %cst_76 = arith.constant 0.000000e+00 : f32
    %170 = vector.broadcast %cst_76 : f32 to vector<8x64xf32>
    %171 = arith.maximumf %169, %170 : vector<8x64xf32>
    %172 = arith.truncf %171 : vector<8x64xf32> to vector<8x64xbf16>
    %c0_77 = arith.constant 0 : index
    %c0_78 = arith.constant 0 : index
    %c0_79 = arith.constant 0 : index
    %173 = vector.load %arg14[%c0_77, %c0_78, %c0_79] : memref<1x64x32xbf16, #tpu.memory_space<vmem>>, vector<1x64x32xbf16>
    %174 = vector.shape_cast %173 : vector<1x64x32xbf16> to vector<64x32xbf16>
    %cst_80 = arith.constant dense<0.000000e+00> : vector<8x32xf32>
    %175 = tpu.matmul %172, %174, %cst_80 {dimension_numbers = #tpu.dot_dimension_numbers<[1], [0], [0], [1], [0, 0, 1, 1], [], []>} : vector<8x64xbf16>, vector<64x32xbf16>, vector<8x32xf32> -> vector<8x32xf32>
    %c0_81 = arith.constant 0 : index
    %c0_82 = arith.constant 0 : index
    %c0_83 = arith.constant 0 : index
    %176 = vector.load %arg15[%c0_81, %c0_82, %c0_83] : memref<1x1x32xf32, #tpu.memory_space<vmem>>, vector<1x1x32xf32>
    %177 = vector.shape_cast %176 : vector<1x1x32xf32> to vector<1x32xf32>
    %178 = vector.broadcast %177 : vector<1x32xf32> to vector<8x32xf32>
    %179 = arith.addf %175, %178 : vector<8x32xf32>
    %180 = arith.addf %137, %179 : vector<8x32xf32>
    %c1_i32 = arith.constant 1 : i32
    %181 = arith.cmpi slt, %arg1, %c1_i32 : i32
    %182 = arith.extui %181 : i1 to i32
    %c0_i32_84 = arith.constant 0 : i32
    %183 = arith.cmpi ne, %182, %c0_i32_84 : i32
    scf.if %183 {
      %187 = vector.shape_cast %180 : vector<8x32xf32> to vector<1x8x32xf32>
      %c0_87 = arith.constant 0 : index
      %c0_88 = arith.constant 0 : index
      %c0_89 = arith.constant 0 : index
      %188 = vector.load %arg18[%c0_87, %c0_88, %c0_89] : memref<1x8x32xf32, #tpu.memory_space<vmem>>, vector<1x8x32xf32>
      tpu.vector_store %arg18[%c0_87, %c0_88, %c0_89], %187 {strides = array<i32>} : memref<1x8x32xf32, #tpu.memory_space<vmem>>, vector<1x8x32xf32>,
    } else {
    }
    %c1_i32_85 = arith.constant 1 : i32
    %184 = arith.cmpi eq, %arg1, %c1_i32_85 : i32
    %185 = arith.extui %184 : i1 to i32
    %c0_i32_86 = arith.constant 0 : i32
    %186 = arith.cmpi ne, %185, %c0_i32_86 : i32
    scf.if %186 {
      %c0_87 = arith.constant 0 : index
      %c0_88 = arith.constant 0 : index
      %187 = vector.load %arg16[%c0_87, %c0_88] : memref<1x32xf32, #tpu.memory_space<vmem>>, vector<1x32xf32>
      %c0_89 = arith.constant 0 : index
      %c0_90 = arith.constant 0 : index
      %188 = vector.load %arg17[%c0_89, %c0_90] : memref<1x32xf32, #tpu.memory_space<vmem>>, vector<1x32xf32>
      %cst_91 = arith.constant dense<0.000000e+00> : vector<8xf32>
      %189 = vector.multi_reduction <add>, %180, %cst_91 [1] : vector<8x32xf32> to vector<8xf32>
      %190 = vector.shape_cast %189 : vector<8xf32> to vector<8x1xf32>
      %cst_92 = arith.constant 3.200000e+01 : f32
      %191 = vector.broadcast %cst_92 : f32 to vector<8x1xf32>
      %192 = arith.divf %190, %191 : vector<8x1xf32>
      %193 = vector.broadcast %192 : vector<8x1xf32> to vector<8x32xf32>
      %194 = arith.subf %180, %193 : vector<8x32xf32>
      %195 = arith.mulf %194, %194 : vector<8x32xf32>
      %cst_93 = arith.constant dense<0.000000e+00> : vector<8xf32>
      %196 = vector.multi_reduction <add>, %195, %cst_93 [1] : vector<8x32xf32> to vector<8xf32>
      %197 = vector.shape_cast %196 : vector<8xf32> to vector<8x1xf32>
      %cst_94 = arith.constant 3.200000e+01 : f32
      %198 = vector.broadcast %cst_94 : f32 to vector<8x1xf32>
      %199 = arith.divf %197, %198 : vector<8x1xf32>
      %cst_95 = arith.constant 9.99999974E-6 : f32
      %200 = vector.broadcast %cst_95 : f32 to vector<8x1xf32>
      %201 = arith.addf %199, %200 : vector<8x1xf32>
      %202 = math.rsqrt %201 : vector<8x1xf32>
      %203 = vector.broadcast %202 : vector<8x1xf32> to vector<8x32xf32>
      %204 = arith.mulf %194, %203 : vector<8x32xf32>
      %205 = vector.broadcast %187 : vector<1x32xf32> to vector<8x32xf32>
      %206 = arith.mulf %204, %205 : vector<8x32xf32>
      %207 = vector.broadcast %188 : vector<1x32xf32> to vector<8x32xf32>
      %208 = arith.addf %206, %207 : vector<8x32xf32>
      %209 = vector.shape_cast %208 : vector<8x32xf32> to vector<1x8x32xf32>
      %c0_96 = arith.constant 0 : index
      %c0_97 = arith.constant 0 : index
      %c0_98 = arith.constant 0 : index
      %210 = vector.load %arg18[%c0_96, %c0_97, %c0_98] : memref<1x8x32xf32, #tpu.memory_space<vmem>>, vector<1x8x32xf32>
      tpu.vector_store %arg18[%c0_96, %c0_97, %c0_98], %209 {strides = array<i32>} : memref<1x8x32xf32, #tpu.memory_space<vmem>>, vector<1x8x32xf32>,
    } else {
    }
    return
  }
  func.func @transform_0(%arg0: i32, %arg1: i32) -> (i32, i32, i32) {
    %c0_i32 = arith.constant 0 : i32
    %c0_i32_0 = arith.constant 0 : i32
    %c0_i32_1 = arith.constant 0 : i32
    return %arg0, %c0_i32, %c0_i32_0 : i32, i32, i32
  }
  func.func @transform_1(%arg0: i32, %arg1: i32) -> (i32, i32, i32) {
    %c0_i32 = arith.constant 0 : i32
    %c0_i32_0 = arith.constant 0 : i32
    %c0_i32_1 = arith.constant 0 : i32
    return %arg0, %c0_i32, %c0_i32_0 : i32, i32, i32
  }
  func.func @transform_2(%arg0: i32, %arg1: i32) -> (i32, i32, i32) {
    %c0_i32 = arith.constant 0 : i32
    %c0_i32_0 = arith.constant 0 : i32
    %c0_i32_1 = arith.constant 0 : i32
    return %arg1, %c0_i32, %c0_i32_0 : i32, i32, i32
  }
  func.func @transform_3(%arg0: i32, %arg1: i32) -> (i32, i32, i32) {
    %c0_i32 = arith.constant 0 : i32
    %c0_i32_0 = arith.constant 0 : i32
    %c0_i32_1 = arith.constant 0 : i32
    return %arg1, %c0_i32, %c0_i32_0 : i32, i32, i32
  }
  func.func @transform_4(%arg0: i32, %arg1: i32) -> (i32, i32, i32) {
    %c0_i32 = arith.constant 0 : i32
    %c0_i32_0 = arith.constant 0 : i32
    %c0_i32_1 = arith.constant 0 : i32
    return %arg1, %c0_i32, %c0_i32_0 : i32, i32, i32
  }
  func.func @transform_5(%arg0: i32, %arg1: i32) -> (i32, i32, i32) {
    %c0_i32 = arith.constant 0 : i32
    %c0_i32_0 = arith.constant 0 : i32
    %c0_i32_1 = arith.constant 0 : i32
    return %arg1, %c0_i32, %c0_i32_0 : i32, i32, i32
  }
  func.func @transform_6(%arg0: i32, %arg1: i32) -> (i32, i32, i32) {
    %c0_i32 = arith.constant 0 : i32
    %c0_i32_0 = arith.constant 0 : i32
    %c0_i32_1 = arith.constant 0 : i32
    return %arg1, %c0_i32, %c0_i32_0 : i32, i32, i32
  }
  func.func @transform_7(%arg0: i32, %arg1: i32) -> (i32, i32, i32) {
    %c0_i32 = arith.constant 0 : i32
    %c0_i32_0 = arith.constant 0 : i32
    %c0_i32_1 = arith.constant 0 : i32
    return %arg1, %c0_i32, %c0_i32_0 : i32, i32, i32
  }
  func.func @transform_8(%arg0: i32, %arg1: i32) -> (i32, i32, i32) {
    %c0_i32 = arith.constant 0 : i32
    %c0_i32_0 = arith.constant 0 : i32
    %c0_i32_1 = arith.constant 0 : i32
    return %arg1, %c0_i32, %c0_i32_0 : i32, i32, i32
  }
  func.func @transform_9(%arg0: i32, %arg1: i32) -> (i32, i32, i32) {
    %c0_i32 = arith.constant 0 : i32
    %c0_i32_0 = arith.constant 0 : i32
    %c0_i32_1 = arith.constant 0 : i32
    return %arg1, %c0_i32, %c0_i32_0 : i32, i32, i32
  }
  func.func @transform_10(%arg0: i32, %arg1: i32) -> (i32, i32, i32) {
    %c0_i32 = arith.constant 0 : i32
    %c0_i32_0 = arith.constant 0 : i32
    %c0_i32_1 = arith.constant 0 : i32
    return %arg1, %c0_i32, %c0_i32_0 : i32, i32, i32
  }
  func.func @transform_11(%arg0: i32, %arg1: i32) -> (i32, i32, i32) {
    %c0_i32 = arith.constant 0 : i32
    %c0_i32_0 = arith.constant 0 : i32
    %c0_i32_1 = arith.constant 0 : i32
    return %arg1, %c0_i32, %c0_i32_0 : i32, i32, i32
  }
  func.func @transform_12(%arg0: i32, %arg1: i32) -> (i32, i32, i32) {
    %c0_i32 = arith.constant 0 : i32
    %c0_i32_0 = arith.constant 0 : i32
    %c0_i32_1 = arith.constant 0 : i32
    return %arg1, %c0_i32, %c0_i32_0 : i32, i32, i32
  }
  func.func @transform_13(%arg0: i32, %arg1: i32) -> (i32, i32, i32) {
    %c0_i32 = arith.constant 0 : i32
    %c0_i32_0 = arith.constant 0 : i32
    %c0_i32_1 = arith.constant 0 : i32
    return %arg1, %c0_i32, %c0_i32_0 : i32, i32, i32
  }
  func.func @transform_14(%arg0: i32, %arg1: i32) -> (i32, i32) {
    %c0_i32 = arith.constant 0 : i32
    %c0_i32_0 = arith.constant 0 : i32
    %c0_i32_1 = arith.constant 0 : i32
    return %c0_i32, %c0_i32_0 : i32, i32
  }
  func.func @transform_15(%arg0: i32, %arg1: i32) -> (i32, i32) {
    %c0_i32 = arith.constant 0 : i32
    %c0_i32_0 = arith.constant 0 : i32
    %c0_i32_1 = arith.constant 0 : i32
    return %c0_i32, %c0_i32_0 : i32, i32
  }
  func.func @transform_16(%arg0: i32, %arg1: i32) -> (i32, i32, i32) {
    %c0_i32 = arith.constant 0 : i32
    %c0_i32_0 = arith.constant 0 : i32
    %c0_i32_1 = arith.constant 0 : i32
    return %arg0, %c0_i32, %c0_i32_0 : i32, i32, i32
  }
}

</mosaic_0001>

<bundles_post_ra>
// kernel: tpu_custom_call.1
= control target key start
LH: loop header
LB: loop body
LE: loop exit
PB: predicated region body
PF: predicated region fallthrough
CT: control target
= control target key end

     0   :  { %s2950_s0 = inlined_call_operand.hbm [shape: f32[2,8,32], index: 0, kind: input, shape index: {}, may-alias: {0,16}]   ;;  %s2951_s1 = inlined_call_operand.vmem [shape: bf16[2,8,8], index: 1, kind: input, shape index: {}]   ;;  %s2952_s2 = inlined_call_operand.vmem [shape: f32[2,1,32], index: 2, kind: input, shape index: {}]   ;;  %s2953_s3 = inlined_call_operand.hbm [shape: f32[2,1,32], index: 3, kind: input, shape index: {}]   ;;  %s2954_s4 = inlined_call_operand.vmem [shape: bf16[2,32,96], index: 4, kind: input, shape index: {}]   ;;  %s2955_s5 = inlined_call_operand.hbm [shape: f32[2,1,96], index: 5, kind: input, shape index: {}]   ;;  %s2956_s6 = inlined_call_operand.vmem [shape: bf16[2,32,32], index: 6, kind: input, shape index: {}]   ;;  %s2957_s7 = inlined_call_operand.hbm [shape: f32[2,1,32], index: 7, kind: input, shape index: {}]   ;;  %s2958_s8 = inlined_call_operand.hbm [shape: f32[2,1,32], index: 8, kind: input, shape index: {}]   ;;  %s2959_s9 = inlined_call_operand.hbm [shape: f32[2,1,32], index: 9, kind: input, shape index: {}]   ;;  %s2960_s10 = inlined_call_operand.vmem [shape: bf16[2,32,64], index: 10, kind: input, shape index: {}]   ;;  %s2961_s11 = inlined_call_operand.hbm [shape: f32[2,1,64], index: 11, kind: input, shape index: {}]   ;;  %s2962_s12 = inlined_call_operand.vmem [shape: bf16[2,64,32], index: 12, kind: input, shape index: {}]   ;;  %s2963_s13 = inlined_call_operand.hbm [shape: f32[2,1,32], index: 13, kind: input, shape index: {}]   ;;  %s2964_s14 = inlined_call_operand.vmem [shape: f32[1,32], index: 14, kind: input, shape index: {}]   ;;  %s2965_s15 = inlined_call_operand.vmem [shape: f32[1,32], index: 15, kind: input, shape index: {}]   ;;  %s2966_s16 = inlined_call_operand.hbm [shape: f32[2,8,32], index: 16, kind: output, shape index: {}, may-alias: {0,16}]  }
   0x1   :  { %2983 = sst [smem:[#allocation35_spill]] %s2950_s0 }
   0x2   :  { %2984 = sst [smem:[#allocation36_spill]] %s2951_s1 }
   0x3   :  { %2985 = sst [smem:[#allocation37_spill]] %s2952_s2 }
   0x4   :  { %2986 = sst [smem:[#allocation38_spill]] %s2953_s3 }
   0x5   :  { %2987 = sst [smem:[#allocation39_spill]] %s2954_s4 }
   0x6   :  { %2988 = sst [smem:[#allocation40_spill]] %s2955_s5 }
   0x7   :  { %2989 = sst [smem:[#allocation41_spill]] %s2956_s6 }
   0x8   :  { %2990 = sst [smem:[#allocation42_spill]] %s2957_s7 }
   0x9   :  { %2991 = sst [smem:[#allocation43_spill]] %s2958_s8 }
   0xa   :  { %2992 = sst [smem:[#allocation44_spill]] %s2959_s9 }
   0xb   :  { %2993 = sst [smem:[#allocation45_spill]] %s2960_s10 }
   0xc   :  { %2994 = sst [smem:[#allocation46_spill]] %s2961_s11 }
   0xd   :  { %2995 = sst [smem:[#allocation47_spill]] %s2962_s12 }
   0xe   :  { %2996 = sst [smem:[#allocation48_spill]] %s2963_s13 }
   0xf   :  { %2997 = sst [smem:[#allocation49_spill]] %s2964_s14 }
  0x10   :  { %2998 = sst [smem:[#allocation50_spill]] %s2965_s15 }
  0x11   :  { %2999 = sst [smem:[#allocation51_spill]] %s2966_s16 }
  0x12   :  { %21 = vsyncpa [#allocation4], 0 }
  0x13   :  { %23 = vsyncpa [#allocation4 + $0x1], 0 }
  0x14   :  { %24 = vsyncpa [#allocation7], 0 }
  0x15   :  { %26 = vsyncpa [#allocation7 + $0x1], 0 }
  0x16   :  { %27 = vsyncpa [#allocation10], 0 }
  0x17   :  { %29 = vsyncpa [#allocation10 + $0x1], 0 }
  0x18   :  { %30 = vsyncpa [#allocation13], 0 }
  0x19   :  { %32 = vsyncpa [#allocation13 + $0x1], 0 }
  0x1a   :  { %33 = vsyncpa [#allocation16], 0 }
  0x1b   :  { %35 = vsyncpa [#allocation16 + $0x1], 0 }
  0x1c   :  { %36 = vsyncpa [#allocation5], 0 }
  0x1d   :  { %38 = vsyncpa [#allocation5 + $0x1], 0  ;;  %s2490_s21 = smov 0   ;;  %s2492_s22 = smov 0  }
  0x1e   :  { %s2494_s23 = smov 0   ;;  %s2496_s24 = smov 0  }
  0x1f   :  { %s2498_s25 = smov 0   ;;  %s2500_s26 = smov 0  }
  0x20   :  { %s2502_s27 = smov 0   ;;  %s2504_s28 = smov 0  }
  0x21   :  { %s2506_s29 = smov 0   ;;  %s2508_s30 = smov 0  }
  0x22   :  { %s2510_s0 = smov 0  }
  0x23 LB: > { %3000 = sst [smem:[#allocation24_spill]] %s2356_s23  ;;  %p71_p0 = scmp.eq.s32.totalorder %s2388_s0, 0  ;;  %s2388_s0 = sphi %s2510_s0, %s44_s0   ;;  %s2384_s30 = sphi %s2508_s30, %s3064_s30   ;;  %s2380_s29 = sphi %s2506_s29, %s3063_s29   ;;  %s2376_s28 = sphi %s2504_s28, %s3062_s28   ;;  %s2372_s27 = sphi %s2502_s27, %s3069_s27   ;;  %s2368_s26 = sphi %s2500_s26, %s3060_s26   ;;  %s2364_s25 = sphi %s2498_s25, %s3068_s25   ;;  %s2360_s24 = sphi %s2496_s24, %s3067_s24   ;;  %s2356_s23 = sphi %s2494_s23, %s3058_s23   ;;  %s2352_s22 = sphi %s2492_s22, %s3066_s22   ;;  %s2348_s21 = sphi %s2490_s21, %s3065_s21  }
  0x24   : > { %3001 = sst [smem:[#allocation25_spill]] %s2360_s24  ;;  %p148_p1 = scmp.ne.s32.totalorder %s2356_s23, %s2352_s22 }
  0x25   : > { %3002 = sst [smem:[#allocation26_spill]] %s2368_s26  ;;  %p2973_p2 = scmp.lt.s32.totalorder %s2388_s0, 4 }
  0x26   : > { %3003 = sst [smem:[#allocation27_spill]] %s2372_s27  ;;  %p150_p3 = por %p148_p1, %p71_p0 }
  0x27   : > { %3004 = sst [smem:[#allocation28_spill]] %s2376_s28  ;;  %s2552_s17 = sand.u32 1, %s2388_s0  }
  0x28   : > { %3005 = sst [smem:[#allocation29_spill]] %s2380_s29  ;;  %s2555_s18 = sand.u32 1, %s2356_s23  }
  0x29   : > { %3006 = sst [smem:[#allocation30_spill]] %s2384_s30  ;;  %s547_s14 = scalar_lea.vmem [#allocation6], %s2555_s18 }
  0x2a   : > { %s3007_s3 = sld [smem:[#allocation38_spill]]  ;;  %s554_s12 = sshll.u32 %s547_s14, 4  ;;  %s555_s12 = int_to_ptr.vmem [resolvable:$true] %s554_s12 }
  0x2b   : > { %p2564_p4 = pnand %p2973_p2, %p150_p3  ;;  %p1739_p5 = scmp.ge.s32.totalorder %s2388_s0, 1 }
  0x2c   : > { %p693_p6 = scmp.lt.s32.totalorder %s2388_s0, 5  ;;  %s2968_s19 = scalar_lea.sflag [#allocation7], %s2552_s17 }
  0x2d   : > { %s3010_s7 = sld [smem:[#allocation42_spill]]  ;;  %s597_s4 = scalar_lea.vmem [#allocation9], %s2555_s18 }
  0x2e   : > { %p2575_p7 = pnand %p1739_p5, %p693_p6  ;;  %s604_s2 = sshll.u32 %s597_s4, 4  ;;  %s605_s2 = int_to_ptr.vmem [resolvable:$true] %s604_s2 }
  0x2f   : > { %s3011_s9 = sld [smem:[#allocation44_spill]]  ;;  %p70_p9 = scmp.ne.s32.totalorder %s2368_s26, %s2364_s25 }
  0x30   : > { %s550_s16 = scalar_lea.hbm %s3007_s3, %s2380_s29  ;;  %p76_p11 = scmp.ne.s32.totalorder %s2364_s25, %s2360_s24 }
  0x31   : > { %s552_s15 = sshll.u32 %s550_s16, 4  ;;  %s56_s16 = sadd.s32 1, %s2384_s30  ;;  %s553_s15 = int_to_ptr.hbm [resolvable:$true] %s552_s15 }
  0x32   : > { %1848 = dma.hbm_to_vmem [thread:$0]  (!%p2564_p4), %s553_s15, 16, %s555_s12, %s2968_s19  }
  0x33   : > { %s600_s3 = scalar_lea.hbm %s3010_s7, %s2380_s29  ;;  %s2970_s12 = scalar_lea.sflag [#allocation10], %s2552_s17 }
  0x34   : > { %s602_s6 = sshll.u32 %s600_s3, 4  ;;  %s631_s3 = scalar_lea.vmem [#allocation12], %s2555_s18  ;;  %s603_s6 = int_to_ptr.hbm [resolvable:$true] %s602_s6 }
  0x35   : > { %1854 = dma.hbm_to_vmem [thread:$0]  (!%p2564_p4), %s603_s6, 16, %s605_s2, %s2970_s12  }
  0x36   : > { %s634_s20 = scalar_lea.hbm %s3011_s9, %s2380_s29  ;;  %s638_s4 = sshll.u32 %s631_s3, 4  ;;  %s639_s4 = int_to_ptr.vmem [resolvable:$true] %s638_s4 }
  0x37   : > { %s636_s19 = sshll.u32 %s634_s20, 4  ;;  %s2969_s7 = scalar_lea.sflag [#allocation13], %s2552_s17  ;;  %s637_s19 = int_to_ptr.hbm [resolvable:$true] %s636_s19 }
  0x38   : > { %1860 = dma.hbm_to_vmem [thread:$0]  (!%p2564_p4), %s637_s19, 16, %s639_s4, %s2969_s7  }
  0x39   : > { %s2600_s2 = sadd.s32 4294967295, %s2388_s0   ;;  %s1734_s6 = sadd.s32 4294967294, %s2388_s0  }
  0x3a   : > { %s53_s15 = sadd.s32 1, %s2380_s29  ;;  %s63_s20 = sadd.s32 1, %s2368_s26 }
  0x3b   : > { %p54_p8 = scmp.ge.s32.totalorder %s53_s15, 2  ;;  %p2616_p10 = por %p71_p0, %p70_p9 }
  0x3c   : > { %p77_p13 = scmp.eq.s32.totalorder %s2600_s2, 0  ;;  %s141_s4 = sadd.s32 1, %s2356_s23 }
  0x3d   : > { %s3071_s15 = smov (%p54_p8, %s53_s15), 0  ;;  %s3073_s16 = smov (!%p54_p8, %s56_s16), %s2384_s30 }
  0x3e   : > { %3012 = sst [smem:[#allocation31_spill]] %s3071_s15  ;;  %p58_p12 = scmp.ge.s32.totalorder %s3073_s16, 2 }
  0x3f   : > { %s138_s3 = ssub.s32 %s2380_s29, %s3071_s15  ;;  %p2631_p1 = por %p77_p13, %p76_p11 }
  0x40   : > { %s3075_s16 = smov (%p58_p12, %s3073_s16), 0  ;;  %p139_p0 = scmp.eq.s32.totalorder %s138_s3, 0 }
  0x41   : > { %3014 = sst [smem:[#allocation32_spill]] %s3075_s16  ;;  %s60_s12 = ssub.s32 %s2384_s30, %s3075_s16 }
  0x42   : > { %s3015_s7 = scalar_select %p2631_p1, 1, 0 }
  0x43   : > { %p154_p3 = scmp.ne.s32.totalorder %s2352_s22, %s2348_s21  ;;  %p61_p5 = scmp.eq.s32.totalorder %s60_s12, 0 }
  0x44   : > { %p480_p6 = scmp.eq.s32.totalorder %s2600_s2, 3  ;;  %p486_p2 = scmp.eq.s32.totalorder %s1734_s6, 3 }
  0x45   : > { %s2641_s9 = scalar_select %p139_p0, %s2356_s23, %s141_s4  }
  0x46   : > { %s2644_s15 = scalar_select %p61_p5, %s2368_s26, %s63_s20  }
  0x47   : > { %3016 = sst [smem:[#allocation33_spill]] %s2641_s9  ;;  %p2646_p8 = por %p154_p3, %p77_p13 }
  0x48   : > { %3017 = sst [smem:[#allocation34_spill]] %s2644_s15  ;;  %p2653_p12 = por %p480_p6, %p70_p9 }
  0x49   : > { %s512_s21 = sand.u32 1, %s2368_s26   ;;  %p2661_p1 = por %p486_p2, %p76_p11 }
  0x4a   : > { %s1737_s12 = sshll.u32 %s512_s21, 3  ;;  %s1738_s20 = sshll.u32 %s2384_s30, 3 }
  0x4b   : > { %s516_s4 = scalar_lea.vmem [#allocation3], %s1737_s12  ;;  %s3021_s23 = sld [smem:[#allocation35_spill]] }
  0x4c   : > { %s524_s16 = sshll.u32 %s516_s4, 4  ;;  %p3022_p9 = scmp.lt.s32.totalorder %s2388_s0, 4  ;;  %s525_s16 = int_to_ptr.vmem [resolvable:$true] %s524_s16 }
  0x4d   : > { %s3023_s5 = sld [smem:[#allocation40_spill]]  ;;  %s513_s12 = scalar_lea.sflag [#allocation4], %s512_s21 }
  0x4e   : > { %p1843_p13 = pnand %p3022_p9, %p2616_p10  ;;  %s572_s9 = scalar_lea.vmem [#allocation8], %s2555_s18 }
  0x4f   : > { %s3025_s8 = sld [smem:[#allocation43_spill]]  ;;  %s614_s21 = scalar_lea.vmem [#allocation11], %s2555_s18 }
  0x50   : > { %s3027_s11 = sld [smem:[#allocation46_spill]]  ;;  %p3030_p2 = scmp.ne.s32.totalorder (!%p2575_p7), %s3015_s7, 0 }
  0x51   : > { %s520_s28 = scalar_lea.hbm %s3021_s23, %s1738_s20  ;;  %s579_s23 = sshll.u32 %s572_s9, 4  ;;  %s580_s23 = int_to_ptr.vmem [resolvable:$true] %s579_s23 }
  0x52   : > { %s522_s6 = sshll.u32 %s520_s28, 4  ;;  %s3024_s28 = scalar_lea.sflag [#allocation7], %s2552_s17  ;;  %s523_s6 = int_to_ptr.hbm [resolvable:$true] %s522_s6 }
  0x53   : > { %s575_s30 = scalar_lea.hbm %s3023_s5, %s2380_s29  ;;  %s656_s9 = scalar_lea.vmem [#allocation14], %s2555_s18 }
  0x54   : > { %1845 = dma.hbm_to_vmem [thread:$0]  (!%p1843_p13), %s523_s6, 128, %s525_s16, %s513_s12  }
  0x55   : > { %s577_s4 = sshll.u32 %s575_s30, 4  ;;  %s617_s26 = scalar_lea.hbm %s3025_s8, %s2380_s29  ;;  %s578_s4 = int_to_ptr.hbm [resolvable:$true] %s577_s4 }
  0x56   : > { %1851 = dma.hbm_to_vmem [thread:$0]  (!%p2564_p4), %s578_s4, 16, %s580_s23, %s3024_s28  }
  0x57   : > { %s619_s19 = sshll.u32 %s617_s26, 4  ;;  %s621_s16 = sshll.u32 %s614_s21, 4  ;;  %s620_s19 = int_to_ptr.hbm [resolvable:$true] %s619_s19  ;;  %s622_s16 = int_to_ptr.vmem [resolvable:$true] %s621_s16 }
  0x58   : > { %s3026_s30 = scalar_lea.sflag [#allocation10], %s2552_s17  ;;  %s659_s12 = scalar_lea.hbm %s3027_s11, %s2380_s29 }
  0x59   : > { %1857 = dma.hbm_to_vmem [thread:$0]  (!%p2564_p4), %s620_s19, 16, %s622_s16, %s3026_s30  }
  0x5a   : > { %s661_s4 = sshll.u32 %s659_s12, 4  ;;  %s663_s23 = sshll.u32 %s656_s9, 4  ;;  %s662_s4 = int_to_ptr.hbm [resolvable:$true] %s661_s4  ;;  %s664_s23 = int_to_ptr.vmem [resolvable:$true] %s663_s23 }
  0x5b   : > { %s3028_s28 = scalar_lea.sflag [#allocation13], %s2552_s17  ;;  %s3029_s13 = sld [smem:[#allocation48_spill]] }
  0x5c   : > { %1863 = dma.hbm_to_vmem [thread:$0]  (!%p2564_p4), %s662_s4, 16, %s664_s23, %s3028_s28  }
  0x5d   : > { %s681_s21 = scalar_lea.vmem [#allocation15], %s2555_s18  ;;  %s679_s19 = scalar_lea.sflag [#allocation16], %s2555_s18 }
  0x5e   : > { %s688_s5 = sshll.u32 %s681_s21, 4  ;;  %s2711_s16 = sand.u32 (!%p2575_p7), 1, %s2364_s25   ;;  %s689_s5 = int_to_ptr.vmem [resolvable:$true] %s688_s5 }
  0x5f   : > { %697 = sbr.rel (%p2575_p7) target bundleno = 2201 (0x899), region = 84  ;;  %s2981_s17 = sshll.u32 (!%p2575_p7), %s2711_s16, 3 }
  0x60   : > { %s700_s30 = scalar_lea.sflag (!%p2575_p7), [#allocation4], %s2711_s16  ;;  %s2717_s20 = scalar_lea.vmem (!%p2575_p7), [#allocation3], %s2981_s17 }
  0x61   : > { %s684_s26 = scalar_lea.hbm %s3029_s13, %s2380_s29 }
  0x62   : > { %s686_s8 = sshll.u32 %s684_s26, 4  ;;  %s687_s8 = int_to_ptr.hbm [resolvable:$true] %s686_s8 }
  0x63   : > { %1866 = dma.hbm_to_vmem [thread:$0]  (!%p2564_p4), %s687_s8, 16, %s689_s5, %s679_s19  }
  0x64   : > { %2323 = dma.done.wait (%p3030_p2), %s700_s30, 128  }
  0x65   : > { %2325 = vsyncadd (%p3030_p2), %s700_s30, 4294967168  ;;  %s709_s5 = sand.u32 1, %s2600_s2   ;;  %s2725_s8 = sand.u32 1, %s2352_s22  }
  0x66   : > { %s710_s10 = scalar_lea.sflag [#allocation7], %s709_s5 }
  0x67   : > { %2327 = dma.done.wait (%p2646_p8), %s710_s10, 32  }
  0x68   : > { %2329 = vsyncadd (%p2646_p8), %s710_s10, 4294967264  ;;  %s728_s7 = scalar_lea.sflag [#allocation10], %s709_s5 }
  0x69   : > { %2331 = dma.done.wait (%p2646_p8), %s728_s7, 32  }
  0x6a   : > { %2333 = vsyncadd (%p2646_p8), %s728_s7, 4294967264  ;;  %s746_s12 = scalar_lea.sflag [#allocation13], %s709_s5 }
  0x6b   : > { %2335 = dma.done.wait (%p2646_p8), %s746_s12, 32  }
  0x6c   : > { %2337 = vsyncadd (%p2646_p8), %s746_s12, 4294967264  ;;  %s764_s23 = scalar_lea.sflag [#allocation16], %s2725_s8 }
  0x6d   : > { %2339 = dma.done.wait (%p2646_p8), %s764_s23, 16  }
  0x6e   : > { %2341 = vsyncadd (%p2646_p8), %s764_s23, 4294967280  ;;  %s3031_s15 = sld [smem:[#allocation28_spill]]  ;;  %s3039_s23 = sshll.u32 %s2711_s16, 3 }
  0x6f   : > { %s3032_s24 = sld [smem:[#allocation27_spill]]  ;;  %s2790_s29 = scalar_lea.vmem [#allocation17], %s3039_s23 }
  0x70   : > { %s3033_s5 = sld [smem:[#allocation36_spill]] }
  0x71   : > { %s3035_s6 = sld [smem:[#allocation39_spill]] }
  0x72   : > { %s3036_s11 = sld [smem:[#allocation41_spill]] }
  0x73   : > { %s3038_s7 = sld [smem:[#allocation47_spill]] }
  0x74   : > { %p871_p4 = scmp.lt.s32.totalorder %s3031_s15, 1 }
  0x75   : > { %p875_p7 = scmp.lt.s32.totalorder %s3032_s24, 1  ;;  %p1751_p10 = scmp.ne.s32.totalorder %s3032_s24, 0 }
  0x76   : > { %s3077_s15 = smov (!%p871_p4, %s3031_s15), 1 }
  0x77   : > { %s2755_s26 = scalar_select %p875_p7, %s3032_s24, 1 }
  0x78   : > { %s1742_s21 = sshll.u32 %s3077_s15, 2 }
  0x79   : > { %s2760_s10 = scalar_lea.vmem %s3033_s5, %s1742_s21  ;;  %s1810_s28 = sshll.u32 %s2755_s26, 4 }
  0x7a   : > { %s1813_s9 = sshll.u32 %s2755_s26, 5  ;;  %s2771_s14 = scalar_lea.vmem %s3035_s6, %s1810_s28 }
  0x7b   : > { %s2776_s15 = scalar_lea.vmem %s3036_s11, %s1810_s28  ;;  %s3037_s21 = sld [smem:[#allocation45_spill]] }
  0x7c   : > { %s2786_s12 = scalar_lea.vmem %s3038_s7, %s1813_s9 }
  0x7d   : > { %902 = sbr.rel (%p1751_p10) target bundleno = 132 (0x84), region = 120 }
  0x81   : > { %s2781_s30 = scalar_lea.vmem %s3037_s21, %s1810_s28 }
  0x82   : > { %v903_v0 = vld [vmem:[%s2717_s20] sm:$0xff]  ;;  %vm904_vm0 = vcmask 261120  }
  0x83   : > { %905 = vst.msk [vmem:[%s2790_s29] sm:$0xff] %vm904_vm0, %v903_v0 }
  0x84 PF: > { %vm909_vm1 = vcmask 261120   ;;  %v2390_v3 = vmov 32.0   ;;  %v1815_v15 = vld [vmem:[%s2771_s14 + $0x8] sm:$0xff]  ;;  %v1814_v16 = vld [vmem:[%s2771_s14] sm:$0xff]  ;;  %s3040_s17 = sld [smem:[#allocation37_spill]]  ;;  %s3042_s18 = scalar_lea.vmem [#allocation6], %s2725_s8 }
  0x85   : > { %1984 = vrcp.f32 %v2390_v3  ;;  %977 = vmatpush.bf16.msra.mxu0 %v1815_v15  ;;  %v1977_v29 = vld [vmem:[%s3042_s18] ss:$0 sm:$0xff]  ;;  %s3043_s14 = scalar_lea.vmem [#allocation8], %s2725_s8  ;;  %s2391_s6 = smov 104   ;;  %vm1024_vm6 = vcmask 1043456   ;;  %vm992_vm7 = vcmask 64512  }
  0x86   : > { %v1978_v33 = vld [vmem:[%s3043_s14] ss:$0 sm:$0xff]  ;;  %s2392_s2 = smov 120   ;;  %s2393_s4 = smov 96   ;;  %vm1047_vm8 = vcmask 60416   ;;  %vm1110_vm9 = vcmask 126016  }
  0x87   : > { %s2394_s9 = smov 56   ;;  %s2395_s28 = smov 72   ;;  %v984_v55 = vld [vmem:[%s2760_s10] sm:$0xf]  ;;  %vm1173_vm10 = vcmask 191616   ;;  %vm1236_vm11 = vcmask 257216  }
  0x88   : > { %s2396_s24 = smov 88   ;;  %s2398_s23 = smov 80   ;;  %v985_v56 = vunpack.c.l.bf16 %v984_v55  ;;  %vm1383_vm15 = vcmask 523264  }
  0x89   : > { %978 = vmatpush.bf16.msra.mxu0 %v1814_v16  ;;  %s2399_s19 = smov 64   ;;  %s2400_s10 = smov 40  }
  0x8a   : > { %v2796_v1 = vld [vmem:[%s2790_s29] sm:$0xff]  ;;  %s3041_s20 = scalar_lea.vmem %s3040_s17, %s2755_s26  ;;  %s2397_s26 = smov 112  }
  0x8b   : > { %v910_v2 = vsel %vm909_vm1, %v2796_v1, 0.0  ;;  %v1985_v4 = vpop.eup %1984  ;;  %v1976_v26 = vld [vmem:[%s3041_s20] ss:$0 sm:$0xff]  ;;  %s2401_s21 = smov 48   ;;  %s2402_s5 = smov 16  }
  0x8c   : > { %911 = vadd.xlane.f32.xlu0 %v910_v2  ;;  %v914_v5 = vmul.f32 32.0, %v1985_v4  ;;  %vm918_vm2 = vweird.f32 %v1985_v4  ;;  %s2403_s1 = smov 8   ;;  %s2404_s7 = smov 24  }
  0x8d   : > { %s3044_s11 = scalar_lea.vmem [#allocation9], %s2725_s8  ;;  %s3047_s13 = scalar_lea.vmem [#allocation14], %s2725_s8 }
  0x8e   : > { %v915_v6 = vsub.f32 1.0, %v914_v5  ;;  %s3048_s17 = scalar_lea.vmem [#allocation15], %s2725_s8  ;;  %s3049_s20 = sld [smem:[#allocation27_spill]] }
  0x90   : > { %v916_v7 = vmul.f32 %v1985_v4, %v915_v6 }
  0x92   : > { %v917_v8 = vadd.f32 %v1985_v4, %v916_v7 }
  0x94   : > { %v2800_v9 = vsel %vm918_vm2, %v1985_v4, %v917_v8  ;;  %p1804_p11 = scmp.ge.s32.totalorder %s3049_s20, 1 }
  0xff   : > { %v912_v10 = vpop.xlane.xlu0 %911 }
 0x100   : > { %v920_v11 = vmul.f32 %v2800_v9, %v912_v10 }
 0x102   : > { %v921_v12 = vsub.f32 %v2796_v1, %v920_v11 }
 0x104   : > { %v922_v13 = vmul.f32 %v921_v12, %v921_v12 }
 0x106   : > { %v923_v14 = vsel %vm909_vm1, %v922_v13, 0.0 }
 0x107   : > { %924 = vadd.xlane.f32.xlu0 %v923_v14 }
 0x17a   : > { %v925_v17 = vpop.xlane.xlu0 %924 }
 0x17b   : > { %v926_v18 = vmul.f32 %v925_v17, %v2800_v9 }
 0x17d   : > { %v927_v19 = vadd.f32 1e-05, %v926_v18 }
 0x17f   : > { %1986 = vrsqrt.f32 %v927_v19  ;;  %vm934_vm4 = vweird.f32 %v927_v19 }
 0x185   : > { %v1987_v20 = vpop.eup %1986 }
 0x186   : > { %v929_v21 = vmul.f32 %v1987_v20, %v927_v19  ;;  %vm935_vm3 = vweird.f32 %v1987_v20 }
 0x187   : > { %vm936_vm5 = vmor %vm934_vm4, %vm935_vm3 }
 0x188   : > { %v930_v22 = vmul.f32 %v1987_v20, %v929_v21 }
 0x18a   : > { %v931_v23 = vmul.f32 0.5, %v930_v22 }
 0x18c   : > { %v932_v24 = vsub.f32 1.5, %v931_v23 }
 0x18e   : > { %v933_v25 = vmul.f32 %v1987_v20, %v932_v24 }
 0x190   : > { %v937_v27 = vsel %vm936_vm5, %v1987_v20, %v933_v25 }
 0x191   : > { %v938_v28 = vmul.f32 %v937_v27, %v921_v12 }
 0x193   : > { %v942_v30 = vmul.f32 %v1976_v26, %v938_v28 }
 0x195   : > { %v946_v31 = vadd.f32 %v1977_v29, %v942_v30 }
 0x197   : > { %v947_v32 = vpack.c.bf16 %v946_v31, %v946_v31 }
 0x199   : > { %1760 = vmatmul.msk.bf16.vlgmr.msra.gmra.mxu0 %vm909_vm1, %v947_v32 }
 0x216   : > { %v980_v34 = vpop.f32.mrf.mxu0 }
 0x217   : > { %v981_v35 = vadd.f32 %v1978_v33, %v980_v34 }
 0x219   : > { %v986_v36 = vpack.c.bf16 %v981_v35, %v981_v35 }
 0x21b   : > { %v988_v37 = vunpack.c.l.b16 %v986_v36 }
 0x21d   : > { %v2818_v38 = vpack.c.b16 %v988_v37, %v988_v37 }
 0x21e   : > { %v982_v39 = vpop.f32.mrf.mxu0 }
 0x21f   : > { %1175 = vrot.lane.b32.xlu0 %v2818_v38, %s2391_s6  ;;  %1049 = vrot.lane.b32.xlu2 %v2818_v38, %s2392_s2 }
 0x220   : > { %990 = vrot.lane.b32.xlu1 %v2818_v38, %s2393_s4 }
 0x227   : > { %1079 = vrot.lane.b32.xlu0 %v2818_v38, %s2394_s9  ;;  %1177 = vrot.lane.b32.xlu2 %v2818_v38, %s2395_s28 }
 0x228   : > { %1051 = vrot.lane.b32.xlu1 %v2818_v38, %s2396_s24 }
 0x22f   : > { %1112 = vrot.lane.b32.xlu2 %v2818_v38, %s2397_s26 }
 0x230   : > { %1114 = vrot.lane.b32.xlu1 %v2818_v38, %s2398_s23 }
 0x237   : > { %1019 = vrot.lane.b32.xlu2 %v2818_v38, %s2399_s19 }
 0x279   : > { %v1050_v40 = vpop.permute.xlu2 %1049 }
 0x281   : > { %v1178_v41 = vpop.permute.xlu2 %1177 }
 0x282   : > { %v1183_v52 = vsel %vm992_vm7, %v1178_v41, 0 }
 0x289   : > { %v1113_v42 = vpop.permute.xlu2 %1112 }
 0x291   : > { %v1176_v43 = vpop.permute.xlu0 %1175  ;;  %v1020_v44 = vpop.permute.xlu2 %1019 }
 0x292   : > { %v991_v45 = vpop.permute.xlu1 %990  ;;  %v1026_v46 = vsel %vm1024_vm6, %v1020_v44, 0 }
 0x293   : > { %v997_v47 = vsel %vm992_vm7, %v991_v45, 0  ;;  %1035 = vmatpush.bf16.msra.mxu2 %v1026_v46 }
 0x294   : > { %1006 = vmatpush.bf16.xpose.msra.mxu1 %v997_v47 }
 0x299   : > { %v1080_v48 = vpop.permute.xlu0 %1079 }
 0x29a   : > { %v1052_v49 = vpop.permute.xlu1 %1051  ;;  %v1085_v50 = vsel %vm1024_vm6, %v1080_v48, 0 }
 0x29b   : > { %1761 = vmatmul.msk.bf16.vlgmr.msra.gmra.mxu1 %vm992_vm7, %v986_v36  ;;  %v1057_v51 = vsel %vm992_vm7, %v1052_v49, 0  ;;  %1094 = vmatpush.bf16.msrb.mxu2 %v1085_v50 }
 0x29c   : > { %1066 = vmatpush.bf16.xpose.msra.mxu3 %v1057_v51 }
 0x2a2   : > { %v1115_v53 = vpop.permute.xlu1 %1114 }
 0x2a3   : > { %1763 = vmatmul.msk.bf16.vlgmr.msra.gmra.mxu3 %vm992_vm7, %v1050_v40  ;;  %v1120_v54 = vsel %vm992_vm7, %v1115_v53, 0 }
 0x2a4   : > { %1192 = vmatpush.bf16.xpose.msrb.mxu3 %v1183_v52  ;;  %1129 = vmatpush.bf16.xpose.msrb.mxu0 %v1120_v54 }
 0x2ab   : > { %1765 = vmatmul.msk.bf16.vlgmr.msrb.gmra.mxu0 %vm992_vm7, %v1113_v42 }
 0x2b3   : > { %1767 = vmatmul.msk.bf16.vlgmr.msrb.gmra.mxu3 %vm992_vm7, %v1176_v43 }
 0x318   : > { %v1008_v57 = vpop.f32.mrf.mxu1 }
 0x319   : > { %v1009_v58 = vadd.f32 %v1008_v57, %v985_v56 }
 0x31b   : > { %v1012_v59 = vsel %vm992_vm7, %v1009_v58, -inf }
 0x31c   : > { %1013 = vmax.xlane.f32.xlu1 %v1012_v59 }
 0x320   : > { %v1010_v60 = vpop.f32.mrf.mxu1 }
 0x326   : > { %v1068_v61 = vpop.f32.mrf.mxu3 }
 0x327   : > { %v1069_v62 = vadd.f32 %v1068_v61, %v985_v56 }
 0x328   : > { %v1131_v63 = vpop.f32.mrf.mxu0 }
 0x329   : > { %v1132_v0 = vadd.f32 %v1131_v63, %v985_v56  ;;  %v1072_v2 = vsel %vm992_vm7, %v1069_v62, -inf  ;;  %v1817_v63 = vld [vmem:[%s2776_s15 + $0x8] sm:$0xff] }
 0x32a   : > { %1073 = vmax.xlane.f32.xlu2 %v1072_v2  ;;  %1268 = vmatpush.bf16.msra.mxu0 %v1817_v63 }
 0x32b   : > { %v1135_v3 = vsel %vm992_vm7, %v1132_v0, -inf }
 0x32c   : > { %1136 = vmax.xlane.f32.xlu1 %v1135_v3 }
 0x32e   : > { %v1070_v4 = vpop.f32.mrf.mxu3 }
 0x330   : > { %v1133_v5 = vpop.f32.mrf.mxu0 }
 0x336   : > { %v1194_v6 = vpop.f32.mrf.mxu3 }
 0x337   : > { %v1195_v7 = vadd.f32 %v1194_v6, %v985_v56  ;;  %v1979_v6 = vld [vmem:[%s3044_s11] ss:$0 sm:$0xff] }
 0x339   : > { %v1198_v8 = vsel %vm992_vm7, %v1195_v7, -inf }
 0x33a   : > { %1199 = vmax.xlane.f32.xlu0 %v1198_v8 }
 0x33e   : > { %v1196_v10 = vpop.f32.mrf.mxu3 }
 0x342   : > { %1205 = vrot.lane.b32.xlu2 %v2818_v38, %s2400_s10 }
 0x345   : > { %1142 = vrot.lane.b32.xlu1 %v2818_v38, %s2401_s21 }
 0x38f   : > { %v1014_v11 = vpop.xlane.xlu1 %1013 }
 0x390   : > { %v1015_v12 = vsub.f32 %v1009_v58, %v1014_v11 }
 0x392   : > { %v1016_v13 = vmul.f32 1.442695, %v1015_v12 }
 0x394   : > { %1988 = vpow2.f32 %v1016_v13 }
 0x39a   : > { %v1989_v14 = vpop.eup %1988 }
 0x39b   : > { %v1041_v15 = vsel %vm992_vm7, %v1989_v14, 0.0  ;;  %v1018_v16 = vpack.c.bf16 %v1989_v14, %v1989_v14 }
 0x39c   : > { %1042 = vadd.xlane.f32.xlu1 %v1041_v15 }
 0x39d   : > { %v1074_v17 = vpop.xlane.xlu2 %1073  ;;  %1762 = vmatmul.msk.bf16.vlgmr.msra.gmra.mxu2 %vm992_vm7, %v1018_v16 }
 0x39e   : > { %v1075_v18 = vsub.f32 %v1069_v62, %v1074_v17 }
 0x39f   : > { %v1137_v19 = vpop.xlane.xlu1 %1136 }
 0x3a0   : > { %v1076_v20 = vmul.f32 1.442695, %v1075_v18  ;;  %v1138_v21 = vsub.f32 %v1132_v0, %v1137_v19  ;;  %v1816_v0 = vld [vmem:[%s2776_s15] sm:$0xff]  ;;  %v1819_v18 = vld [vmem:[%s2781_s30 + $0x8] sm:$0xff]  ;;  %s3045_s15 = scalar_lea.vmem [#allocation11], %s2725_s8 }
 0x3a1   : > { %1269 = vmatpush.bf16.msra.mxu0 %v1816_v0  ;;  %v1818_v19 = vld [vmem:[%s2781_s30] sm:$0xff]  ;;  %s3046_s30 = scalar_lea.vmem [#allocation12], %s2725_s8 }
 0x3a2   : > { %1990 = vpow2.f32 %v1076_v20  ;;  %v1139_v22 = vmul.f32 1.442695, %v1138_v21  ;;  %v1823_v20 = vld [vmem:[%s2786_s12 + $0x18] sm:$0xff] }
 0x3a3   : > { %1391 = vmatpush.bf16.msra.mxu3 %v1823_v20 }
 0x3a4   : > { %1992 = vpow2.f32 %v1139_v22  ;;  %v1822_v22 = vld [vmem:[%s2786_s12 + $0x10] sm:$0xff] }
 0x3a5   : > { %v1206_v23 = vpop.permute.xlu2 %1205 }
 0x3a6   : > { %v1211_v24 = vsel %vm1024_vm6, %v1206_v23, 0 }
 0x3a7   : > { %1220 = vmatpush.bf16.msra.mxu2 %v1211_v24  ;;  %1392 = vmatpush.bf16.msra.mxu3 %v1822_v22 }
 0x3a8   : > { %v1991_v25 = vpop.eup %1990 }
 0x3a9   : > { %v1078_v28 = vpack.c.bf16 %v1991_v25, %v1991_v25  ;;  %v1100_v32 = vsel %vm992_vm7, %v1991_v25, 0.0 }
 0x3aa   : > { %v1993_v26 = vpop.eup %1992 }
 0x3ab   : > { %v1163_v27 = vsel %vm992_vm7, %v1993_v26, 0.0  ;;  %v1141_v37 = vpack.c.bf16 %v1993_v26, %v1993_v26 }
 0x3ac   : > { %1164 = vadd.xlane.f32.xlu0 %v1163_v27 }
 0x3ad   : > { %v1200_v29 = vpop.xlane.xlu0 %1199  ;;  %1764 = vmatmul.msk.bf16.vlgmr.msrb.gmra.mxu2 %vm992_vm7, %v1078_v28 }
 0x3ae   : > { %v1201_v30 = vsub.f32 %v1195_v7, %v1200_v29 }
 0x3b0   : > { %v1202_v31 = vmul.f32 1.442695, %v1201_v30  ;;  %v1980_v30 = vld [vmem:[%s3045_s15] ss:$0 sm:$0xff] }
 0x3b2   : > { %1994 = vpow2.f32 %v1202_v31 }
 0x3b4   : > { %1101 = vadd.xlane.f32.xlu0 %v1100_v32 }
 0x3b7   : > { %v1143_v33 = vpop.permute.xlu1 %1142 }
 0x3b8   : > { %v1995_v34 = vpop.eup %1994  ;;  %v1148_v35 = vsel %vm1024_vm6, %v1143_v33, 0  ;;  %v1981_v33 = vld [vmem:[%s3046_s30] ss:$0 sm:$0xff] }
 0x3b9   : > { %1157 = vmatpush.bf16.msrb.mxu1 %v1148_v35  ;;  %v1226_v36 = vsel %vm992_vm7, %v1995_v34, 0.0  ;;  %v1204_v38 = vpack.c.bf16 %v1995_v34, %v1995_v34 }
 0x3ba   : > { %1227 = vadd.xlane.f32.xlu2 %v1226_v36 }
 0x3bc   : > { %1766 = vmatmul.msk.bf16.vlgmr.msrb.gmra.mxu1 %vm992_vm7, %v1141_v37  ;;  %v1821_v37 = vld [vmem:[%s2786_s12 + $0x8] sm:$0xff] }
 0x3bd   : > { %1768 = vmatmul.msk.bf16.vlgmr.msra.gmra.mxu2 %vm992_vm7, %v1204_v38  ;;  %1338 = vmatpush.bf16.msra.mxu1 %v1819_v18  ;;  %v1820_v38 = vld [vmem:[%s2786_s12] sm:$0xff] }
 0x3be   : > { %1393 = vmatpush.bf16.msra.mxu3 %v1821_v37 }
 0x3c1   : > { %1339 = vmatpush.bf16.msra.mxu1 %v1818_v19 }
 0x3c2   : > { %1394 = vmatpush.bf16.msra.mxu3 %v1820_v38 }
 0x40f   : > { %v1043_v39 = vpop.xlane.xlu1 %1042 }
 0x410   : > { %1996 = vrcp.f32 %v1043_v39  ;;  %v1982_v39 = vld [vmem:[%s3047_s13] ss:$0 sm:$0xff] }
 0x416   : > { %v1997_v40 = vpop.eup %1996 }
 0x41f   : > { %v1165_v45 = vpop.xlane.xlu0 %1164 }
 0x420   : > { %v1037_v41 = vpop.f32.mrf.mxu2  ;;  %1998 = vrcp.f32 %v1165_v45  ;;  %v1983_v45 = vld [vmem:[%s3048_s17] ss:$0 sm:$0xff] }
 0x421   : > { %v1045_v42 = vmul.f32 %v1997_v40, %v1037_v41 }
 0x423   : > { %v1046_v43 = vpack.c.bf16 %v1045_v42, %v1045_v42 }
 0x425   : > { %1048 = vst.msk [vmem:[#allocation2] sm:$0xf] %vm1047_vm8, %v1046_v43 }
 0x426   : > { %v1999_v49 = vpop.eup %1998 }
 0x427   : > { %v1102_v47 = vpop.xlane.xlu0 %1101 }
 0x428   : > { %v1039_v44 = vpop.f32.mrf.mxu2  ;;  %2000 = vrcp.f32 %v1102_v47 }
 0x42d   : > { %v1228_v53 = vpop.xlane.xlu2 %1227 }
 0x42e   : > { %v2001_v54 = vpop.eup %2000  ;;  %2002 = vrcp.f32 %v1228_v53 }
 0x430   : > { %v1096_v46 = vpop.f32.mrf.mxu2 }
 0x431   : > { %v1104_v55 = vmul.f32 %v2001_v54, %v1096_v46 }
 0x433   : > { %v1105_v58 = vpack.c.bf16 %v1104_v55, %v1104_v55 }
 0x434   : > { %v2003_v59 = vpop.eup %2002 }
 0x438   : > { %v1098_v48 = vpop.f32.mrf.mxu2 }
 0x439   : > { %v1159_v50 = vpop.f32.mrf.mxu1 }
 0x43a   : > { %v1167_v51 = vmul.f32 %v1999_v49, %v1159_v50 }
 0x43c   : > { %v1168_v52 = vpack.c.bf16 %v1167_v51, %v1167_v51 }
 0x43e   : > { %1170 = vrot.lane.b32.xlu0 %v1168_v52, %s2402_s5 }
 0x440   : > { %v1222_v56 = vpop.f32.mrf.mxu2 }
 0x441   : > { %v1161_v57 = vpop.f32.mrf.mxu1  ;;  %v1230_v60 = vmul.f32 %v2003_v59, %v1222_v56 }
 0x443   : > { %v1231_v62 = vpack.c.bf16 %v1230_v60, %v1230_v60 }
 0x446   : > { %1107 = vrot.lane.b32.xlu0 %v1105_v58, %s2403_s1 }
 0x448   : > { %v1224_v61 = vpop.f32.mrf.mxu2 }
 0x44e   : > { %1233 = vrot.lane.b32.xlu0 %v1231_v62, %s2404_s7 }
 0x4b0   : > { %v1171_v2 = vpop.permute.xlu0 %1170 }
 0x4b8   : > { %v1108_v3 = vpop.permute.xlu0 %1107 }
 0x4b9   : > { %1111 = vst.msk [vmem:[#allocation2] sm:$0xf] %vm1110_vm9, %v1108_v3 }
 0x4ba   : > { %1174 = vst.msk [vmem:[#allocation2] sm:$0xf] %vm1173_vm10, %v1171_v2 }
 0x4c0   : > { %v1234_v4 = vpop.permute.xlu0 %1233 }
 0x4c1   : > { %1237 = vst.msk [vmem:[#allocation2] sm:$0xf] %vm1236_vm11, %v1234_v4 }
 0x4c8   : > { %v1238_v5 = vld [vmem:[#allocation2] sm:$0xf] }
 0x4c9   : > { %1777 = vmatmul.msk.bf16.vlgmr.msra.gmra.mxu0 %vm909_vm1, %v1238_v5 }
 0x546   : > { %v1271_v7 = vpop.f32.mrf.mxu0 }
 0x547   : > { %v1272_v8 = vadd.f32 %v1979_v6, %v1271_v7 }
 0x549   : > { %v1275_v10 = vadd.f32 %v1272_v8, %v2796_v1 }
 0x54b   : > { %v1278_v11 = vsel %vm909_vm1, %v1275_v10, 0.0 }
 0x54c   : > { %1279 = vadd.xlane.f32.xlu0 %v1278_v11 }
 0x54e   : > { %v1273_v12 = vpop.f32.mrf.mxu0 }
 0x5bf   : > { %v1280_v13 = vpop.xlane.xlu0 %1279 }
 0x5c0   : > { %v1281_v14 = vmul.f32 %v1280_v13, %v2800_v9 }
 0x5c2   : > { %v1282_v15 = vsub.f32 %v1275_v10, %v1281_v14 }
 0x5c4   : > { %v1283_v16 = vmul.f32 %v1282_v15, %v1282_v15 }
 0x5c6   : > { %v1284_v17 = vsel %vm909_vm1, %v1283_v16, 0.0 }
 0x5c7   : > { %1285 = vadd.xlane.f32.xlu2 %v1284_v17 }
 0x63a   : > { %v1286_v1 = vpop.xlane.xlu2 %1285 }
 0x63b   : > { %v1287_v21 = vmul.f32 %v1286_v1, %v2800_v9 }
 0x63d   : > { %v1288_v23 = vadd.f32 1e-05, %v1287_v21 }
 0x63f   : > { %2004 = vrsqrt.f32 %v1288_v23  ;;  %vm1295_vm13 = vweird.f32 %v1288_v23 }
 0x645   : > { %v2005_v24 = vpop.eup %2004 }
 0x646   : > { %v1290_v25 = vmul.f32 %v2005_v24, %v1288_v23  ;;  %vm1296_vm12 = vweird.f32 %v2005_v24 }
 0x647   : > { %vm1297_vm14 = vmor %vm1295_vm13, %vm1296_vm12 }
 0x648   : > { %v1291_v26 = vmul.f32 %v2005_v24, %v1290_v25 }
 0x64a   : > { %v1292_v27 = vmul.f32 0.5, %v1291_v26 }
 0x64c   : > { %v1293_v28 = vsub.f32 1.5, %v1292_v27 }
 0x64e   : > { %v1294_v29 = vmul.f32 %v2005_v24, %v1293_v28 }
 0x650   : > { %v1298_v31 = vsel %vm1297_vm14, %v2005_v24, %v1294_v29 }
 0x651   : > { %v1299_v32 = vmul.f32 %v1298_v31, %v1282_v15 }
 0x653   : > { %v1303_v34 = vmul.f32 %v1980_v30, %v1299_v32 }
 0x655   : > { %v1307_v35 = vadd.f32 %v1981_v33, %v1303_v34 }
 0x657   : > { %v1308_v36 = vpack.c.bf16 %v1307_v35, %v1307_v35 }
 0x659   : > { %1786 = vmatmul.msk.bf16.vlgmr.msra.gmra.mxu1 %vm909_vm1, %v1308_v36 }
 0x6d6   : > { %v1341_v40 = vpop.f32.mrf.mxu1 }
 0x6d7   : > { %v1342_v41 = vadd.f32 %v1982_v39, %v1341_v40 }
 0x6d9   : > { %v1345_v42 = vmax.f32 %v1342_v41, 0.0 }
 0x6db   : > { %v1346_v43 = vpack.c.bf16 %v1345_v42, %v1345_v42 }
 0x6dd   : > { %1803 = vmatmul.msk.bf16.vlgmr.msra.gmra.mxu3 %vm1383_vm15, %v1346_v43 }
 0x6de   : > { %v1343_v44 = vpop.f32.mrf.mxu1 }
 0x760   : > { %v1396_v46 = vpop.f32.mrf.mxu3 }
 0x761   : > { %v1397_v47 = vadd.f32 %v1983_v45, %v1396_v46 }
 0x763   : > { %v1400_v48 = vadd.f32 %v1397_v47, %v1275_v10 }
 0x764   : > { %1404 = sbr.rel (%p1804_p11) target bundleno = 1898 (0x76a), region = 124 }
 0x768   : > { %v1398_v49 = vpop.f32.mrf.mxu3 }
 0x769   : > { %1405 = vst.msk [vmem:[%s2790_s29] sm:$0xff] %vm909_vm1, %v1400_v48 }
 0x76a PF: > { %s3050_s12 = sld [smem:[#allocation27_spill]] }
 0x770   : > { %p1805_p0 = scmp.ne.s32.totalorder %s3050_s12, 1 }
 0x771   : > { %s3051_s14 = sld [smem:[#allocation49_spill]] (!%p1805_p0) }
 0x772   : > { %1409 = sbr.rel (%p1805_p0) target bundleno = 2180 (0x884), region = 128  ;;  %s3052_s4 = sld [smem:[#allocation50_spill]] (!%p1805_p0) }
 0x777   : > { %v1412_v50 = vsel %vm909_vm1, %v1400_v48, 0.0  ;;  %v2006_v2 = vld [vmem:[%s3051_s14] ss:$0 sm:$0xff] }
 0x778   : > { %1413 = vadd.xlane.f32.xlu0 %v1412_v50 }
 0x7eb   : > { %v1414_v51 = vpop.xlane.xlu0 %1413 }
 0x7ec   : > { %v1415_v52 = vmul.f32 %v1414_v51, %v2800_v9 }
 0x7ee   : > { %v1416_v53 = vsub.f32 %v1400_v48, %v1415_v52 }
 0x7f0   : > { %v1417_v54 = vmul.f32 %v1416_v53, %v1416_v53 }
 0x7f2   : > { %v1418_v55 = vsel %vm909_vm1, %v1417_v54, 0.0 }
 0x7f3   : > { %1419 = vadd.xlane.f32.xlu0 %v1418_v55 }
 0x866   : > { %v1420_v56 = vpop.xlane.xlu0 %1419 }
 0x867   : > { %v1421_v57 = vmul.f32 %v1420_v56, %v2800_v9  ;;  %v2007_v9 = vld [vmem:[%s3052_s4] ss:$0 sm:$0xff] }
 0x869   : > { %v1422_v58 = vadd.f32 1e-05, %v1421_v57 }
 0x86b   : > { %2008 = vrsqrt.f32 %v1422_v58  ;;  %vm1429_vm2 = vweird.f32 %v1422_v58 }
 0x871   : > { %v2009_v59 = vpop.eup %2008 }
 0x872   : > { %v1424_v60 = vmul.f32 %v2009_v59, %v1422_v58  ;;  %vm1430_vm0 = vweird.f32 %v2009_v59 }
 0x873   : > { %vm1431_vm3 = vmor %vm1429_vm2, %vm1430_vm0 }
 0x874   : > { %v1425_v61 = vmul.f32 %v2009_v59, %v1424_v60 }
 0x876   : > { %v1426_v62 = vmul.f32 0.5, %v1425_v61 }
 0x878   : > { %v1427_v63 = vsub.f32 1.5, %v1426_v62 }
 0x87a   : > { %v1428_v0 = vmul.f32 %v2009_v59, %v1427_v63 }
 0x87c   : > { %v1432_v3 = vsel %vm1431_vm3, %v2009_v59, %v1428_v0 }
 0x87d   : > { %v1433_v4 = vmul.f32 %v1432_v3, %v1416_v53 }
 0x87f   : > { %v1437_v5 = vmul.f32 %v2006_v2, %v1433_v4 }
 0x881   : > { %v1441_v6 = vadd.f32 %v2007_v9, %v1437_v5 }
 0x883   : > { %1442 = vst.msk [vmem:[%s2790_s29] sm:$0xff] %vm909_vm1, %v1441_v6 }
 0x884 PF: > { %s3053_s9 = sld [smem:[#allocation28_spill]]  ;;  %s1456_s21 = sshll.u32 %s2790_s29, 4  ;;  %s1457_s21 = int_to_ptr.vmem [resolvable:$true] %s1456_s21 }
 0x885   : > { %s3054_s23 = sld [smem:[#allocation51_spill]]  ;;  %s1444_s1 = scalar_lea.sflag [#allocation5], %s2711_s16 }
 0x88a   : > { %s1807_s28 = sshll.u32 %s3053_s9, 3 }
 0x88b   : > { %s3055_s19 = smov %s3054_s23  ;;  %s1454_s10 = scalar_lea.hbm %s3054_s23, %s1807_s28 }
 0x88c   : > { %s1458_s5 = sshll.u32 %s1454_s10, 4  ;;  %s2270_s13 = scalar_lea.hbm %s3055_s19, 16  ;;  %s1459_s5 = int_to_ptr.hbm [resolvable:$true] %s1458_s5 }
 0x88d   : > { %s2264_s7 = sshra.s32 %s1459_s5, 4  ;;  %s2265_s7 = int_to_ptr.hbm [resolvable:$true] %s2264_s7 }
 0x88e   : > { %s2266_s11 = scalar_lea.hbm %s2265_s7, 8  ;;  %p2271_p8 = scmp.lt.s32.totalorder %s2265_s7, %s3055_s19 }
 0x88f   : > { %p2267_p3 = scmp.ne.s32.totalorder %s2265_s7, %s2266_s11  ;;  %p2272_p9 = scmp.lt.s32.totalorder %s2270_s13, %s2266_s11 }
 0x891   : > { %p2268_p5 = pnand %p2267_p3, %p2653_p12  ;;  %p2273_p13 = por %p2272_p9, %p2271_p8 }
 0x893   : > { %p2269_p6 = pneg %p2268_p5 }
 0x895   : > { %p2274_p2 = pnand %p2273_p13, %p2269_p6 }
 0x897   : > { %2277 = shalt.err (!%p2274_p2)
}
 0x898   : > { %1840 = dma.vmem_to_hbm [thread:$0]  (%p2653_p12), %s1457_s21, 128, %s1459_s5, %s1444_s1  }
 0x899 PF: > { %s3056_s29 = sld [smem:[#allocation25_spill]]  ;;  %p1872_p4 = scmp.ge.s32.totalorder %s2388_s0, 2 }
 0x89b   : > { %p1868_p7 = pnand %p1872_p4, %p2661_p1 }
 0x89d   : > { %p1869_p10 = pneg %p1868_p7 }
 0x89f   : > { %s1470_s16 = sand.u32 1, %s3056_s29  }
 0x8a0   : > { %s1471_s12 = scalar_lea.sflag [#allocation5], %s1470_s16 }
 0x8a1   : > { %2343 = dma.done.wait (%p1869_p10), %s1471_s12, 128  }
 0x8a2   : > { %2345 = vsyncadd (%p1869_p10), %s1471_s12, 4294967168  ;;  %s44_s0 = sadd.s32 1, %s2388_s0   ;;  %s3057_s8 = sld [smem:[#allocation24_spill]] }
 0x8a3   : > { %p41_p11 = scmp.ge.s32.totalorder %s44_s0, 6   ;;  %s3058_s23 = sld [smem:[#allocation33_spill]] }
 0x8a4   : > { %s3059_s27 = sld [smem:[#allocation26_spill]]  ;;  %s3065_s21 = smov %s2352_s22 }
 0x8a5   : > { %s3060_s26 = sld [smem:[#allocation34_spill]]  ;;  %s3067_s24 = smov %s2364_s25 }
 0x8a6   : > { %s3061_s18 = sld [smem:[#allocation29_spill]] }
 0x8a7   : > { %s3062_s28 = sld [smem:[#allocation30_spill]] }
 0x8a8   : > { %s3063_s29 = sld [smem:[#allocation31_spill]]  ;;  %s3066_s22 = smov %s3057_s8 }
 0x8a9   : > { %s3064_s30 = sld [smem:[#allocation32_spill]]  ;;  %43 = sbr.rel (!%p41_p11) target bundleno = 35 (0x23), region = 244 }
 0x8aa   : > { %s3068_s25 = smov %s3059_s27 }
 0x8ac   : > { %s3069_s27 = smov %s3061_s18 }
 0x8ae   :  { %1477 = vsyncpa [#allocation4], 1 }
 0x8af   :  { %1479 = vsyncpa [#allocation4 + $0x1], 1 }
 0x8b0   :  { %1480 = vsyncpa [#allocation7], 1 }
 0x8b1   :  { %1482 = vsyncpa [#allocation7 + $0x1], 1 }
 0x8b2   :  { %1483 = vsyncpa [#allocation10], 1 }
 0x8b3   :  { %1485 = vsyncpa [#allocation10 + $0x1], 1 }
 0x8b4   :  { %1486 = vsyncpa [#allocation13], 1 }
 0x8b5   :  { %1488 = vsyncpa [#allocation13 + $0x1], 1 }
 0x8b6   :  { %1489 = vsyncpa [#allocation16], 1 }
 0x8b7   :  { %1491 = vsyncpa [#allocation16 + $0x1], 1 }
 0x8b8   :  { %1492 = vsyncpa [#allocation5], 1 }
 0x8b9   :  { %1494 = vsyncpa [#allocation5 + $0x1], 1 }

</bundles_post_ra>
